<compile_context>
chip_gen: v7x
topology: tpu7x:2x2x1
jax: 0.10.0
libtpu: 0.0.40
codegen_flags: <defaults>
</compile_context>

<pallas_src>
import functools

import jax
import jax.numpy as jnp
from jax.experimental import pallas as pl
from jax.experimental.pallas import tpu as pltpu

_INV_SQRT2 = 0.7071067811865476  # 1/sqrt(2), hoisted constant


def _ffn_kernel(x_ref, gamma_ref, beta_ref, w1_ref, b1_ref, w2_ref, b2_ref,
                o_ref, *, eps):
    # ---- LayerNorm over the feature axis, f32 math (matches torch defaults) ----
    x = x_ref[...].astype(jnp.float32)                       # (TM, D)
    mean = jnp.mean(x, axis=-1, keepdims=True)                # (TM, 1)
    centered = x - mean
    var = jnp.mean(centered * centered, axis=-1, keepdims=True)
    inv = jax.lax.rsqrt(var + eps)
    xn = centered * inv
    xn = xn * gamma_ref[...].astype(jnp.float32) + beta_ref[...].astype(jnp.float32)

    # ---- Linear(dim -> hidden), MXU fed in the weights' dtype, f32 accum ----
    w1 = w1_ref[...]
    h = jnp.dot(xn.astype(w1.dtype), w1, preferred_element_type=jnp.float32)
    h = h + b1_ref[...].astype(jnp.float32)

    # ---- exact (erf) GELU, as in torch nn.GELU() ----
    h = 0.5 * h * (1.0 + jax.lax.erf(h * _INV_SQRT2))

    # ---- Linear(hidden -> dim) ----
    w2 = w2_ref[...]
    y = jnp.dot(h.astype(w2.dtype), w2, preferred_element_type=jnp.float32)
    y = y + b2_ref[...].astype(jnp.float32)

    o_ref[...] = y.astype(o_ref.dtype)


def _pick_block_m(n, dtype):
    """Row-tile size: multiple of the sublane packing, capped so the
    (TM, H) intermediate + double-buffered tiles fit comfortably in the
    v7x 64 MiB VMEM even at ViT-class dims."""
    sub = 16 if jnp.dtype(dtype).itemsize == 2 else 8
    if n <= sub:
        return n  # full-array block also satisfies the (8,128) rule
    tm = min(256, n)
    tm -= tm % sub
    return max(tm, sub)


def feed_forward(x, gamma, beta, w1, b1, w2, b2, *, eps=1e-5, block_m=None):
    """x: (B, S, D) -> (B, S, D). Pass bf16 w1/w2 to use the bf16 MXU path."""
    B, S, D = x.shape
    H = w1.shape[1]
    N = B * S
    x2d = x.reshape(N, D)

    if block_m is None:
        block_m = _pick_block_m(N, x.dtype)
    block_m = min(block_m, N)
    grid_m = pl.cdiv(N, block_m)

    # Biases / LN affine presented as (1, feature) for lane-aligned broadcast.
    gamma2d = gamma.reshape(1, D)
    beta2d = beta.reshape(1, D)
    b1_2d = b1.reshape(1, H)
    b2_2d = b2.reshape(1, D)

    w_item = jnp.dtype(w1.dtype).itemsize
    x_item = jnp.dtype(x.dtype).itemsize

    # Advisory cost for XLA's scheduler around the custom call.
    cost = pl.CostEstimate(
        flops=4 * N * D * H,                # two (N,D)x(D,H)-class matmuls
        transcendentals=N * H + N,          # erf per GELU element + rsqrt per row
        bytes_accessed=(2 * N * D * x_item                       # x in, y out
                        + 2 * D * H * w_item                     # w1, w2 (resident)
                        + (2 * D + H + D) * w_item),             # affine + biases
    )

    out = pl.pallas_call(
        functools.partial(_ffn_kernel, eps=eps),
        out_shape=jax.ShapeDtypeStruct((N, D), x.dtype),
        grid=(grid_m,),
        in_specs=[
            pl.BlockSpec((block_m, D), lambda i: (i, 0)),   # x: streamed row tiles
            pl.BlockSpec((1, D), lambda i: (0, 0)),         # gamma (resident)
            pl.BlockSpec((1, D), lambda i: (0, 0)),         # beta  (resident)
            pl.BlockSpec((D, H), lambda i: (0, 0)),         # w1    (resident)
            pl.BlockSpec((1, H), lambda i: (0, 0)),         # b1    (resident)
            pl.BlockSpec((H, D), lambda i: (0, 0)),         # w2    (resident)
            pl.BlockSpec((1, D), lambda i: (0, 0)),         # b2    (resident)
        ],
        out_specs=pl.BlockSpec((block_m, D), lambda i: (i, 0)),
        compiler_params=pltpu.CompilerParams(
            # Row tiles are independent -> shard across both v7x TensorCores.
            dimension_semantics=("parallel",),
            # Resident weights + double-buffered tiles, with headroom under
            # the 64 MiB v7x VMEM (v5e/v6e have 128 MiB so this is safe there).
            vmem_limit_bytes=48 * 1024 * 1024,
        ),
        cost_estimate=cost,
    )(x2d, gamma2d, beta2d, w1, b1_2d, w2, b2_2d)

    return out.reshape(B, S, D)


def _reference(x, gamma, beta, w1, b1, w2, b2, eps=1e-5):
    xf = x.astype(jnp.float32)
    mu = jnp.mean(xf, axis=-1, keepdims=True)
    var = jnp.mean((xf - mu) ** 2, axis=-1, keepdims=True)
    xn = (xf - mu) * jax.lax.rsqrt(var + eps) * gamma + beta
    h = xn @ w1.astype(jnp.float32) + b1
    h = 0.5 * h * (1.0 + jax.lax.erf(h / jnp.sqrt(2.0)))
    return (h @ w2.astype(jnp.float32) + b2).astype(x.dtype)


if __name__ == "__main__":
    # Small but lane-aligned shapes (D, H multiples of 128; N spans >1 row tile).
    B, S, D, H = 2, 256, 128, 256  # batch, seq (num_patches), dim, mlp_dim

    key = jax.random.PRNGKey(0)
    kx, kw1, kb1, kw2, kb2 = jax.random.split(key, 5)

    x = jax.random.normal(kx, (B, S, D), dtype=jnp.float32)

    # Deterministic parameter init (shapes match the PyTorch FeedForward module).
    gamma = jnp.ones((D,), jnp.float32)                        # LayerNorm weight
    beta = jnp.zeros((D,), jnp.float32)                        # LayerNorm bias
    w1 = jax.random.normal(kw1, (D, H), jnp.float32) * 0.05    # Linear(dim, hidden)
    b1 = jax.random.normal(kb1, (H,), jnp.float32) * 0.01
    w2 = jax.random.normal(kw2, (H, D), jnp.float32) * 0.05    # Linear(hidden, dim)
    b2 = jax.random.normal(kb2, (D,), jnp.float32) * 0.01

    y = feed_forward(x, gamma, beta, w1, b1, w2, b2)
    jax.block_until_ready(y)

    y_ref = _reference(x, gamma, beta, w1, b1, w2, b2)
    assert y.shape == (B, S, D)
    assert jnp.allclose(y, y_ref, atol=1e-4, rtol=1e-4), "mismatch vs reference"

    print("KERNEL_OK")
</pallas_src>

<mosaic_0001>
module attributes {stable_mosaic.version = 11 : i64} {
  func.func @_ffn_kernel(%arg0: i32, %arg1: memref<256x128xf32, #tpu.memory_space<vmem>>, %arg2: memref<1x128xf32, #tpu.memory_space<vmem>>, %arg3: memref<1x128xf32, #tpu.memory_space<vmem>>, %arg4: memref<128x256xf32, #tpu.memory_space<vmem>>, %arg5: memref<1x256xf32, #tpu.memory_space<vmem>>, %arg6: memref<256x128xf32, #tpu.memory_space<vmem>>, %arg7: memref<1x128xf32, #tpu.memory_space<vmem>>, %arg8: memref<256x128xf32, #tpu.memory_space<vmem>>) attributes {dimension_semantics = [#tpu.dimension_semantics<parallel>], iteration_bounds = array<i64: 2>, scalar_prefetch = 0 : i64, scratch_operands = 0 : i64, tpu.core_type = #tpu.core_type<tc>, window_params = [{transform_indices = @transform_0, window_bounds = array<i64: 256, 128>}, {pipeline_mode = #tpu.pipeline_mode<synchronous>, transform_indices = @transform_1, window_bounds = array<i64: 1, 128>}, {pipeline_mode = #tpu.pipeline_mode<synchronous>, transform_indices = @transform_2, window_bounds = array<i64: 1, 128>}, {pipeline_mode = #tpu.pipeline_mode<synchronous>, transform_indices = @transform_3, window_bounds = array<i64: 128, 256>}, {pipeline_mode = #tpu.pipeline_mode<synchronous>, transform_indices = @transform_4, window_bounds = array<i64: 1, 256>}, {pipeline_mode = #tpu.pipeline_mode<synchronous>, transform_indices = @transform_5, window_bounds = array<i64: 256, 128>}, {pipeline_mode = #tpu.pipeline_mode<synchronous>, transform_indices = @transform_6, window_bounds = array<i64: 1, 128>}, {transform_indices = @transform_7, window_bounds = array<i64: 256, 128>}]} {
    %c0 = arith.constant 0 : index
    %c0_0 = arith.constant 0 : index
    %0 = vector.load %arg1[%c0, %c0_0] : memref<256x128xf32, #tpu.memory_space<vmem>>, vector<256x128xf32>
    %cst = arith.constant dense<0.000000e+00> : vector<256xf32>
    %1 = vector.multi_reduction <add>, %0, %cst [1] : vector<256x128xf32> to vector<256xf32>
    %2 = vector.shape_cast %1 : vector<256xf32> to vector<256x1xf32>
    %cst_1 = arith.constant 1.280000e+02 : f32
    %3 = vector.broadcast %cst_1 : f32 to vector<256x1xf32>
    %4 = arith.divf %2, %3 : vector<256x1xf32>
    %5 = vector.broadcast %4 : vector<256x1xf32> to vector<256x128xf32>
    %6 = arith.subf %0, %5 : vector<256x128xf32>
    %7 = arith.mulf %6, %6 : vector<256x128xf32>
    %cst_2 = arith.constant dense<0.000000e+00> : vector<256xf32>
    %8 = vector.multi_reduction <add>, %7, %cst_2 [1] : vector<256x128xf32> to vector<256xf32>
    %9 = vector.shape_cast %8 : vector<256xf32> to vector<256x1xf32>
    %cst_3 = arith.constant 1.280000e+02 : f32
    %10 = vector.broadcast %cst_3 : f32 to vector<256x1xf32>
    %11 = arith.divf %9, %10 : vector<256x1xf32>
    %cst_4 = arith.constant 9.99999974E-6 : f32
    %12 = vector.broadcast %cst_4 : f32 to vector<256x1xf32>
    %13 = arith.addf %11, %12 : vector<256x1xf32>
    %14 = math.rsqrt %13 : vector<256x1xf32>
    %15 = vector.broadcast %14 : vector<256x1xf32> to vector<256x128xf32>
    %16 = arith.mulf %6, %15 : vector<256x128xf32>
    %c0_5 = arith.constant 0 : index
    %c0_6 = arith.constant 0 : index
    %17 = vector.load %arg2[%c0_5, %c0_6] : memref<1x128xf32, #tpu.memory_space<vmem>>, vector<1x128xf32>
    %18 = vector.broadcast %17 : vector<1x128xf32> to vector<256x128xf32>
    %19 = arith.mulf %16, %18 : vector<256x128xf32>
    %c0_7 = arith.constant 0 : index
    %c0_8 = arith.constant 0 : index
    %20 = vector.load %arg3[%c0_7, %c0_8] : memref<1x128xf32, #tpu.memory_space<vmem>>, vector<1x128xf32>
    %21 = vector.broadcast %20 : vector<1x128xf32> to vector<256x128xf32>
    %22 = arith.addf %19, %21 : vector<256x128xf32>
    %c0_9 = arith.constant 0 : index
    %c0_10 = arith.constant 0 : index
    %23 = vector.load %arg4[%c0_9, %c0_10] : memref<128x256xf32, #tpu.memory_space<vmem>>, vector<128x256xf32>
    %cst_11 = arith.constant dense<0.000000e+00> : vector<256x256xf32>
    %24 = tpu.matmul %22, %23, %cst_11 {dimension_numbers = #tpu.dot_dimension_numbers<[1], [0], [0], [1], [0, 0, 1, 1], [], []>} : vector<256x128xf32>, vector<128x256xf32>, vector<256x256xf32> -> vector<256x256xf32>
    %c0_12 = arith.constant 0 : index
    %c0_13 = arith.constant 0 : index
    %25 = vector.load %arg5[%c0_12, %c0_13] : memref<1x256xf32, #tpu.memory_space<vmem>>, vector<1x256xf32>
    %26 = vector.broadcast %25 : vector<1x256xf32> to vector<256x256xf32>
    %27 = arith.addf %24, %26 : vector<256x256xf32>
    %cst_14 = arith.constant 5.000000e-01 : f32
    %28 = vector.broadcast %cst_14 : f32 to vector<256x256xf32>
    %29 = arith.mulf %28, %27 : vector<256x256xf32>
    %cst_15 = arith.constant 0.707106769 : f32
    %30 = vector.broadcast %cst_15 : f32 to vector<256x256xf32>
    %31 = arith.mulf %27, %30 : vector<256x256xf32>
    %32 = math.erf %31 : vector<256x256xf32>
    %cst_16 = arith.constant 1.000000e+00 : f32
    %33 = vector.broadcast %cst_16 : f32 to vector<256x256xf32>
    %34 = arith.addf %33, %32 : vector<256x256xf32>
    %35 = arith.mulf %29, %34 : vector<256x256xf32>
    %c0_17 = arith.constant 0 : index
    %c0_18 = arith.constant 0 : index
    %36 = vector.load %arg6[%c0_17, %c0_18] : memref<256x128xf32, #tpu.memory_space<vmem>>, vector<256x128xf32>
    %cst_19 = arith.constant dense<0.000000e+00> : vector<256x128xf32>
    %37 = tpu.matmul %35, %36, %cst_19 {dimension_numbers = #tpu.dot_dimension_numbers<[1], [0], [0], [1], [0, 0, 1, 1], [], []>} : vector<256x256xf32>, vector<256x128xf32>, vector<256x128xf32> -> vector<256x128xf32>
    %c0_20 = arith.constant 0 : index
    %c0_21 = arith.constant 0 : index
    %38 = vector.load %arg7[%c0_20, %c0_21] : memref<1x128xf32, #tpu.memory_space<vmem>>, vector<1x128xf32>
    %39 = vector.broadcast %38 : vector<1x128xf32> to vector<256x128xf32>
    %40 = arith.addf %37, %39 : vector<256x128xf32>
    %c0_22 = arith.constant 0 : index
    %c0_23 = arith.constant 0 : index
    %41 = vector.load %arg8[%c0_22, %c0_23] : memref<256x128xf32, #tpu.memory_space<vmem>>, vector<256x128xf32>
    tpu.vector_store %arg8[%c0_22, %c0_23], %40 {strides = array<i32>} : memref<256x128xf32, #tpu.memory_space<vmem>>, vector<256x128xf32>,
    return
  }
  func.func @transform_0(%arg0: i32) -> (i32, i32) {
    %c0_i32 = arith.constant 0 : i32
    %c0_i32_0 = arith.constant 0 : i32
    return %arg0, %c0_i32 : i32, i32
  }
  func.func @transform_1(%arg0: i32) -> (i32, i32) {
    %c0_i32 = arith.constant 0 : i32
    %c0_i32_0 = arith.constant 0 : i32
    %c0_i32_1 = arith.constant 0 : i32
    return %c0_i32, %c0_i32_0 : i32, i32
  }
  func.func @transform_2(%arg0: i32) -> (i32, i32) {
    %c0_i32 = arith.constant 0 : i32
    %c0_i32_0 = arith.constant 0 : i32
    %c0_i32_1 = arith.constant 0 : i32
    return %c0_i32, %c0_i32_0 : i32, i32
  }
  func.func @transform_3(%arg0: i32) -> (i32, i32) {
    %c0_i32 = arith.constant 0 : i32
    %c0_i32_0 = arith.constant 0 : i32
    %c0_i32_1 = arith.constant 0 : i32
    return %c0_i32, %c0_i32_0 : i32, i32
  }
  func.func @transform_4(%arg0: i32) -> (i32, i32) {
    %c0_i32 = arith.constant 0 : i32
    %c0_i32_0 = arith.constant 0 : i32
    %c0_i32_1 = arith.constant 0 : i32
    return %c0_i32, %c0_i32_0 : i32, i32
  }
  func.func @transform_5(%arg0: i32) -> (i32, i32) {
    %c0_i32 = arith.constant 0 : i32
    %c0_i32_0 = arith.constant 0 : i32
    %c0_i32_1 = arith.constant 0 : i32
    return %c0_i32, %c0_i32_0 : i32, i32
  }
  func.func @transform_6(%arg0: i32) -> (i32, i32) {
    %c0_i32 = arith.constant 0 : i32
    %c0_i32_0 = arith.constant 0 : i32
    %c0_i32_1 = arith.constant 0 : i32
    return %c0_i32, %c0_i32_0 : i32, i32
  }
  func.func @transform_7(%arg0: i32) -> (i32, i32) {
    %c0_i32 = arith.constant 0 : i32
    %c0_i32_0 = arith.constant 0 : i32
    return %arg0, %c0_i32 : i32, i32
  }
}

</mosaic_0001>

<bundles_post_ra>
// kernel: tpu_custom_call.1
= control target key start
LH: loop header
LB: loop body
LE: loop exit
PB: predicated region body
PF: predicated region fallthrough
CT: control target
= control target key end

     0   :  { %12 = vsyncpa [#allocation3], 0  ;;  %s3460_s0 = inlined_call_operand.hbm [shape: f32[512,128], index: 0, kind: input, shape index: {}]   ;;  %s3461_s1 = inlined_call_operand.vmem [shape: f32[1,128], index: 1, kind: input, shape index: {}]   ;;  %s3462_s2 = inlined_call_operand.vmem [shape: f32[1,128], index: 2, kind: input, shape index: {}]   ;;  %s3463_s3 = inlined_call_operand.hbm [shape: f32[128,256], index: 3, kind: input, shape index: {}]   ;;  %s3464_s4 = inlined_call_operand.vmem [shape: f32[1,256], index: 4, kind: input, shape index: {}]   ;;  %s3465_s5 = inlined_call_operand.hbm [shape: f32[256,128], index: 5, kind: input, shape index: {}]   ;;  %s3466_s6 = inlined_call_operand.vmem [shape: f32[1,128], index: 6, kind: input, shape index: {}]   ;;  %s3467_s7 = inlined_call_operand.hbm [shape: f32[512,128], index: 7, kind: output, shape index: {}]  }
   0x1   :  { %14 = vsyncpa [#allocation3 + $0x1], 0 }
   0x2   :  { %15 = vsyncpa [#allocation6], 0 }
   0x3   :  { %16 = vsyncpa [#allocation4], 0 }
   0x4   :  { %18 = vsyncpa [#allocation4 + $0x1], 0  ;;  %s2426_s24 = smov 0   ;;  %s2428_s25 = smov 0  }
   0x5   :  { %s2430_s26 = smov 0   ;;  %s2432_s27 = smov 0  }
   0x6 LB: > { %s2447_s28 = sadd.s32 4294967295, %s2372_s27   ;;  %s1814_s29 = sadd.s32 4294967294, %s2372_s27   ;;  %s2372_s27 = sphi %s2432_s27, %s3489_s27   ;;  %s2368_s26 = sphi %s2430_s26, %s3488_s26   ;;  %s2364_s25 = sphi %s2428_s25, %s3487_s25   ;;  %s2360_s24 = sphi %s2426_s24, %s3486_s24  }
   0x7   : > { %p44_p0 = scmp.ne.s32.totalorder %s2364_s25, %s2360_s24  ;;  %p3468_p1 = scmp.eq.s32.totalorder %s2447_s28, 0 }
   0x8   : > { %p200_p3 = scmp.eq.s32.totalorder %s1814_s29, 1  ;;  %p1815_p5 = scmp.ge.s32.totalorder %s2372_s27, 1 }
   0x9   : > { %p2456_p4 = por %p3468_p1, %p44_p0  ;;  %p207_p7 = scmp.lt.s32.totalorder %s2372_s27, 3 }
   0xa   : > { %p2461_p6 = por %p200_p3, %p44_p0  ;;  %s2374_s10 = smov [#allocation5]  }
   0xb   : > { %s3472_s30 = scalar_select %p2456_p4, 1, 0 }
   0xc   : > { %s3473_s8 = scalar_select %p2461_p6, 1, 0 }
   0xd   : > { %p2466_p8 = pnand %p1815_p5, %p207_p7  ;;  %s225_s11 = sshll.u32 %s2374_s10, 4  ;;  %s2470_s11 = int_to_ptr.vmem [resolvable:$true] %s225_s11 }
   0xe   : > { %s2375_s13 = smov [#allocation7]   ;;  %s2216_s17 = scalar_lea.hbm %s3463_s3, 4096 }
   0xf   : > { %p1961_p9 = pneg %p2466_p8  ;;  %s241_s14 = sshll.u32 %s2375_s13, 4  ;;  %s2481_s14 = int_to_ptr.vmem [resolvable:$true] %s241_s14 }
  0x10   : > { %p2217_p12 = scmp.ne.s32.totalorder %s3463_s3, %s2216_s17  ;;  %p2223_p5 = scmp.lt.u32.totalorder %s2216_s17, %s3463_s3 }
  0x11   : > { %p2477_p11 = pnand %p1961_p9, %p3468_p1 }
  0x13   : > { %p2218_p13 = pneg %p2477_p11 }
  0x15   : > { %p2219_p0 = pnand %p2218_p13, %p2217_p12 }
  0x17   : > { %p2220_p3 = pneg %p2219_p0 }
  0x19   : > { %p2225_p7 = pnand %p2223_p5, %p2220_p3 }
  0x1b   : > { %2228 = shalt.err (!%p2225_p7)
}
  0x1c   : > { %s2229_s22 = scalar_lea.vmem %s2470_s11, 4096  ;;  %p2237_p2 = scmp.lt.s32.totalorder %s2470_s11, %s2470_s11 }
  0x1d   : > { %p2230_p9 = scmp.ne.s32.totalorder %s2470_s11, %s2229_s22  ;;  %p2238_p12 = scmp.lt.s32.totalorder %s2229_s22, %s2229_s22 }
  0x1f   : > { %p2232_p10 = pnand %p2230_p9, %p2218_p13  ;;  %p2239_p0 = por %p2238_p12, %p2237_p2 }
  0x21   : > { %p2233_p1 = pneg %p2232_p10 }
  0x23   : > { %p2240_p6 = pnand %p2239_p0, %p2233_p1 }
  0x25   : > { %2243 = shalt.err (!%p2240_p6)
}
  0x26   : > { %s2376_s23 = smov 256   ;;  %s2377_s29 = smov 16  }
  0x27   : > { %1964 = dma.hbm_to_vmem [thread:$0]  (!%p2477_p11), %s3463_s3, 4096, %s2470_s11, [#allocation6], %s2376_s23, %s2376_s23, %s2377_s29  }
  0x28   : > { %s2244_s17 = scalar_lea.hbm %s3465_s5, 4096 }
  0x29   : > { %p2245_p2 = scmp.ne.s32.totalorder %s3465_s5, %s2244_s17  ;;  %p2251_p10 = scmp.lt.u32.totalorder %s2244_s17, %s3465_s5 }
  0x2b   : > { %p2247_p1 = pnand %p2245_p2, %p2218_p13 }
  0x2d   : > { %p2248_p6 = pneg %p2247_p1 }
  0x2f   : > { %p2253_p3 = pnand %p2251_p10, %p2248_p6 }
  0x31   : > { %2256 = shalt.err (!%p2253_p3)
}
  0x32   : > { %s2257_s11 = scalar_lea.vmem %s2481_s14, 4096  ;;  %p2265_p12 = scmp.lt.s32.totalorder %s2481_s14, %s2481_s14 }
  0x33   : > { %p2258_p5 = scmp.ne.s32.totalorder %s2481_s14, %s2257_s11  ;;  %p2266_p0 = scmp.lt.s32.totalorder %s2257_s11, %s2257_s11 }
  0x35   : > { %p2260_p7 = pnand %p2258_p5, %p2218_p13  ;;  %p2267_p2 = por %p2266_p0, %p2265_p12 }
  0x37   : > { %p2261_p9 = pneg %p2260_p7 }
  0x39   : > { %p2268_p1 = pnand %p2267_p2, %p2261_p9 }
  0x3b   : > { %2271 = shalt.err (!%p2268_p1)
}
  0x3c   : > { %s3469_s22 = smov 128   ;;  %s2379_s23 = smov 8  }
  0x3d   : > { %1967 = dma.hbm_to_vmem [thread:$0]  (!%p2477_p11), %s3465_s5, 4096, %s2481_s14, [#allocation6], %s3469_s22, %s3469_s22, %s2379_s23  }
  0x3e   : > { %s2539_s13 = sadd.s32 1, %s2372_s27   ;;  %s31_s16 = sadd.s32 1, %s2368_s26 }
  0x3f   : > { %s28_s15 = ssub.s32 %s2372_s27, %s2539_s13  ;;  %p38_p6 = scmp.ne.s32.totalorder %s2368_s26, %s2364_s25 }
  0x40   : > { %p29_p13 = scmp.eq.s32.totalorder %s28_s15, 0  ;;  %p39_p10 = scmp.eq.s32.totalorder %s2372_s27, 0 }
  0x41   : > { %p3476_p5 = scmp.eq.s32.totalorder %s2447_s28, 1  ;;  %p1978_p9 = scmp.lt.s32.totalorder %s2372_s27, 2 }
  0x42   : > { %s2548_s17 = scalar_select %p29_p13, %s2368_s26, %s31_s16  }
  0x43   : > { %p40_p3 = por %p39_p10, %p38_p6  ;;  %p2552_p7 = por %p3476_p5, %p38_p6 }
  0x44   : > { %s258_s18 = sand.u32 1, %s2368_s26   ;;  %s1835_s14 = sshll.u32 %s2372_s27, 12 }
  0x45   : > { %s3477_s12 = scalar_select %p2552_p7, 1, 0 }
  0x46   : > { %s1819_s19 = sshll.u32 %s258_s18, 8  ;;  %s2562_s11 = scalar_lea.hbm %s3460_s0, %s1835_s14 }
  0x47   : > { %s262_s29 = scalar_lea.vmem [#allocation2], %s1819_s19  ;;  %p2566_p11 = pnand %p1978_p9, %p40_p3 }
  0x48   : > { %s269_s10 = sshll.u32 %s262_s29, 4  ;;  %s2570_s16 = scalar_lea.sflag [#allocation3], %s258_s18  ;;  %s2564_s10 = int_to_ptr.vmem [resolvable:$true] %s269_s10 }
  0x49   : > { %s2272_s22 = scalar_lea.hbm %s2562_s11, 4096  ;;  %p2274_p0 = pneg %p2566_p11 }
  0x4a   : > { %p2273_p12 = scmp.ne.s32.totalorder %s2562_s11, %s2272_s22  ;;  %s2277_s20 = scalar_lea.hbm %s3460_s0, 8192 }
  0x4b   : > { %p2278_p13 = scmp.lt.u32.totalorder %s2562_s11, %s3460_s0  ;;  %p2279_p6 = scmp.lt.u32.totalorder %s2277_s20, %s2272_s22 }
  0x4c   : > { %p2275_p2 = pnand %p2274_p0, %p2273_p12  ;;  %p2281_p3 = scmp.lt.u32.totalorder %s2272_s22, %s2562_s11 }
  0x4d   : > { %p2280_p10 = por %p2279_p6, %p2278_p13 }
  0x4e   : > { %p2276_p1 = pneg %p2275_p2 }
  0x4f   : > { %p2282_p5 = por %p2281_p3, %p2280_p10 }
  0x51   : > { %p2283_p9 = pnand %p2282_p5, %p2276_p1 }
  0x53   : > { %2286 = shalt.err (!%p2283_p9)
}
  0x54   : > { %s2287_s18 = scalar_lea.vmem %s2564_s10, 4096  ;;  %s2380_s19 = smov [#allocation2]  }
  0x55   : > { %p2288_p12 = scmp.ne.s32.totalorder %s2564_s10, %s2287_s18  ;;  %s2292_s14 = sshll.u32 %s2380_s19, 4  ;;  %s2293_s14 = int_to_ptr.vmem [resolvable:$false] %s2292_s14 }
  0x56   : > { %s2294_s21 = scalar_lea.vmem %s2293_s14, 8192  ;;  %p2295_p4 = scmp.lt.s32.totalorder %s2564_s10, %s2293_s14 }
  0x57   : > { %p2290_p2 = pnand %p2288_p12, %p2274_p0  ;;  %p2296_p13 = scmp.lt.s32.totalorder %s2294_s21, %s2287_s18 }
  0x59   : > { %p2291_p7 = pneg %p2290_p2  ;;  %p2297_p6 = por %p2296_p13, %p2295_p4 }
  0x5b   : > { %p2298_p10 = pnand %p2297_p6, %p2291_p7 }
  0x5d   : > { %2301 = shalt.err (!%p2298_p10)
}
  0x5e   : > { %s3479_s22 = smov 128   ;;  %281 = sbr.rel (%p2466_p8) target bundleno = 1003 (0x3eb), region = 48 }
  0x5f   : > { %1971 = dma.hbm_to_vmem [thread:$0]  (!%p2566_p11), %s2562_s11, 4096, %s2564_s10, %s2570_s16, %s3479_s22, %s3479_s22, %s2379_s23  }
  0x60   : > { %s2604_s20 = sand.u32 (!%p2466_p8), 1, %s2364_s25   ;;  %p3480_p4 = scmp.ne.s32.totalorder (!%p2466_p8), %s3472_s30, 0 }
  0x61   : > { %s1823_s29 = sshll.u32 (!%p2466_p8), %s2604_s20, 8  ;;  %s284_s18 = scalar_lea.sflag (!%p2466_p8), [#allocation3], %s2604_s20 }
  0x62   : > { %s2610_s15 = scalar_lea.vmem (!%p2466_p8), [#allocation2], %s1823_s29 }
  0x65   : > { %2347 = dma.done.wait (%p3480_p4), %s284_s18, 4096  }
  0x66   : > { %2349 = vsyncadd (%p3480_p4), %s284_s18, 4294963200  ;;  %p3481_p7 = scmp.eq.s32.totalorder %s2447_s28, 0 }
  0x68   : > { %2351 = dma.done.wait (%p3481_p7), [#allocation6], 8192   ;;  %p3482_p8 = pmov %p3481_p7 }
  0x69   : > { %v2621_v0 = vld [vmem:[%s2610_s15 + $0x10] sm:$0xff]  ;;  %v2624_v1 = vld [vmem:[%s2610_s15] sm:$0xff]  ;;  %v2629_v2 = vld [vmem:[%s2610_s15 + $0x18] sm:$0xff]  ;;  %s3344_s21 = scalar_lea.vmem [#allocation8], %s1823_s29  ;;  %s1836_s22 = sshll.u32 %s2447_s28, 12 }
  0x6a   : > { %2353 = vsyncadd (%p3482_p8), [#allocation6], 4294959104  ;;  %364 = vadd.xlane.f32.xlu1 %v2621_v0  ;;  %360 = vadd.xlane.f32.xlu0 %v2624_v1  ;;  %v2632_v3 = vld [vmem:[%s2610_s15 + $0x8] sm:$0xff]  ;;  %v2640_v5 = vld [vmem:[%s2610_s15 + $0x20] sm:$0xff]  ;;  %s1722_s29 = sshll.u32 %s3344_s21, 4  ;;  %s3412_s30 = scalar_lea.hbm %s3467_s7, %s1836_s22  ;;  %s3414_s29 = int_to_ptr.vmem [resolvable:$true] %s1722_s29 }
  0x6b   : > { %v2637_v4 = vld [vmem:[%s2610_s15 + $0x28] sm:$0xff]  ;;  %v2645_v6 = vld [vmem:[%s2610_s15 + $0x38] sm:$0xff]  ;;  %v2648_v7 = vld [vmem:[%s2610_s15 + $0x30] sm:$0xff]  ;;  %s1709_s9 = scalar_lea.sflag [#allocation4], %s2604_s20  ;;  %s2302_s23 = scalar_lea.vmem %s3414_s29, 4096 }
  0x6c   : > { %v2653_v8 = vld [vmem:[%s2610_s15 + $0x48] sm:$0xff]  ;;  %v2656_v9 = vld [vmem:[%s2610_s15 + $0x40] sm:$0xff]  ;;  %v2661_v10 = vld [vmem:[%s2610_s15 + $0x58] sm:$0xff]  ;;  %p2303_p11 = scmp.ne.s32.totalorder %s3414_s29, %s2302_s23  ;;  %p3483_p0 = scmp.ne.s32.totalorder %s3477_s12, 0 }
  0x6d   : > { %v2664_v11 = vld [vmem:[%s2610_s15 + $0x50] sm:$0xff]  ;;  %v2669_v12 = vld [vmem:[%s2610_s15 + $0x68] sm:$0xff]  ;;  %v2672_v13 = vld [vmem:[%s2610_s15 + $0x60] sm:$0xff]  ;;  %s2383_s28 = smov [#allocation8]  }
  0x6e   : > { %366 = vadd.xlane.f32.xlu1 %v2629_v2  ;;  %362 = vadd.xlane.f32.xlu0 %v2632_v3  ;;  %v2677_v14 = vld [vmem:[%s2610_s15 + $0x78] sm:$0xff]  ;;  %v2680_v15 = vld [vmem:[%s2610_s15 + $0x70] sm:$0xff]  ;;  %v2685_v16 = vld [vmem:[%s2610_s15 + $0x88] sm:$0xff]  ;;  %p2304_p1 = pnand %p2303_p11, %p3483_p0  ;;  %s2306_s11 = sshll.u32 %s2383_s28, 4  ;;  %s2307_s11 = int_to_ptr.vmem [resolvable:$false] %s2306_s11 }
  0x6f   : > { %v2688_v17 = vld [vmem:[%s2610_s15 + $0x80] sm:$0xff]  ;;  %v2693_v18 = vld [vmem:[%s2610_s15 + $0x98] sm:$0xff]  ;;  %v2696_v19 = vld [vmem:[%s2610_s15 + $0x90] sm:$0xff]  ;;  %s2308_s10 = scalar_lea.vmem %s2307_s11, 8192  ;;  %p2309_p5 = scmp.lt.s32.totalorder %s3414_s29, %s2307_s11 }
  0x70   : > { %v2701_v20 = vld [vmem:[%s2610_s15 + $0xa0] sm:$0xff]  ;;  %v2705_v21 = vld [vmem:[%s2610_s15 + $0xa8] sm:$0xff]  ;;  %v2709_v22 = vld [vmem:[%s2610_s15 + $0xb0] sm:$0xff]  ;;  %p2305_p3 = pneg %p2304_p1  ;;  %p2310_p9 = scmp.lt.s32.totalorder %s2308_s10, %s2302_s23 }
  0x71   : > { %v2713_v23 = vld [vmem:[%s2610_s15 + $0xb8] sm:$0xff]  ;;  %v2717_v24 = vld [vmem:[%s2610_s15 + $0xc0] sm:$0xff]  ;;  %v2721_v25 = vld [vmem:[%s2610_s15 + $0xc8] sm:$0xff] }
  0x72   : > { %370 = vadd.xlane.f32.xlu1 %v2637_v4  ;;  %368 = vadd.xlane.f32.xlu0 %v2640_v5  ;;  %v2725_v26 = vld [vmem:[%s2610_s15 + $0xd0] sm:$0xff]  ;;  %v2729_v27 = vld [vmem:[%s2610_s15 + $0xd8] sm:$0xff]  ;;  %v2733_v28 = vld [vmem:[%s2610_s15 + $0xe0] sm:$0xff]  ;;  %p2311_p12 = por %p2310_p9, %p2309_p5 }
  0x73   : > { %v2737_v29 = vld [vmem:[%s2610_s15 + $0xe8] sm:$0xff]  ;;  %v2741_v30 = vld [vmem:[%s2610_s15 + $0xf0] sm:$0xff]  ;;  %v2745_v31 = vld [vmem:[%s2610_s15 + $0xf8] sm:$0xff] }
  0x74   : > { %v792_v32 = vld [vmem:[#allocation5 + $0x8] sm:$0xff]  ;;  %v794_v33 = vld [vmem:[#allocation5 + $0x18] sm:$0xff]  ;;  %v791_v34 = vld [vmem:[#allocation5] sm:$0xff]  ;;  %p2312_p2 = pnand %p2311_p12, %p2305_p3 }
  0x75   : > { %v1837_v35 = vpack.c.bf16 %v794_v33, %v792_v32  ;;  %v793_v36 = vld [vmem:[#allocation5 + $0x10] sm:$0xff]  ;;  %v796_v37 = vld [vmem:[#allocation5 + $0x28] sm:$0xff]  ;;  %v798_v38 = vld [vmem:[#allocation5 + $0x38] sm:$0xff] }
  0x76   : > { %374 = vadd.xlane.f32.xlu1 %v2645_v6  ;;  %372 = vadd.xlane.f32.xlu0 %v2648_v7  ;;  %v1839_v39 = vpack.c.bf16 %v793_v36, %v791_v34  ;;  %v1841_v40 = vpack.c.bf16 %v798_v38, %v796_v37  ;;  %v795_v41 = vld [vmem:[#allocation5 + $0x20] sm:$0xff]  ;;  %v797_v42 = vld [vmem:[#allocation5 + $0x30] sm:$0xff]  ;;  %v800_v43 = vld [vmem:[#allocation5 + $0x48] sm:$0xff] }
  0x77   : > { %1838 = vmatprep.subr.bf16.mxu0 %v1837_v35  ;;  %v802_v44 = vld [vmem:[#allocation5 + $0x58] sm:$0xff]  ;;  %v1843_v45 = vpack.c.bf16 %v797_v42, %v795_v41  ;;  %v799_v47 = vld [vmem:[#allocation5 + $0x40] sm:$0xff]  ;;  %v801_v48 = vld [vmem:[#allocation5 + $0x50] sm:$0xff] }
  0x78   : > { %1840 = vmatpush1.bf16.msra.mxu0 %v1839_v39  ;;  %v1845_v46 = vpack.c.bf16 %v802_v44, %v800_v43  ;;  %v1847_v49 = vpack.c.bf16 %v801_v48, %v799_v47  ;;  %v804_v41 = vld [vmem:[#allocation5 + $0x68] sm:$0xff]  ;;  %v806_v42 = vld [vmem:[#allocation5 + $0x78] sm:$0xff] }
  0x79   : > { %1842 = vmatprep.subr.bf16.mxu0 %v1841_v40  ;;  %v1849_v44 = vpack.c.bf16 %v806_v42, %v804_v41 }
  0x7a   : > { %378 = vadd.xlane.f32.xlu1 %v2653_v8  ;;  %376 = vadd.xlane.f32.xlu0 %v2656_v9 }
  0x7c   : > { %1844 = vmatpush1.bf16.msra.mxu0 %v1843_v45  ;;  %v805_v45 = vld [vmem:[#allocation5 + $0x70] sm:$0xff] }
  0x7d   : > { %1846 = vmatprep.subr.bf16.mxu0 %v1845_v46 }
  0x7e   : > { %382 = vadd.xlane.f32.xlu1 %v2661_v10  ;;  %380 = vadd.xlane.f32.xlu0 %v2664_v11 }
  0x80   : > { %1848 = vmatpush1.bf16.msra.mxu0 %v1847_v49  ;;  %v808_v49 = vld [vmem:[#allocation5 + $0x88] sm:$0xff] }
  0x81   : > { %1850 = vmatprep.subr.bf16.mxu0 %v1849_v44 }
  0x82   : > { %386 = vadd.xlane.f32.xlu1 %v2669_v12  ;;  %384 = vadd.xlane.f32.xlu0 %v2672_v13 }
  0x86   : > { %390 = vadd.xlane.f32.xlu1 %v2677_v14  ;;  %388 = vadd.xlane.f32.xlu0 %v2680_v15 }
  0x8a   : > { %394 = vadd.xlane.f32.xlu1 %v2685_v16  ;;  %392 = vadd.xlane.f32.xlu0 %v2688_v17 }
  0x8e   : > { %398 = vadd.xlane.f32.xlu1 %v2693_v18  ;;  %396 = vadd.xlane.f32.xlu0 %v2696_v19 }
  0x92   : > { %400 = vadd.xlane.f32.xlu1 %v2701_v20 }
  0x96   : > { %402 = vadd.xlane.f32.xlu1 %v2705_v21 }
  0x9a   : > { %404 = vadd.xlane.f32.xlu1 %v2709_v22 }
  0x9e   : > { %406 = vadd.xlane.f32.xlu1 %v2713_v23 }
  0xa2   : > { %408 = vadd.xlane.f32.xlu1 %v2717_v24 }
  0xa6   : > { %410 = vadd.xlane.f32.xlu1 %v2721_v25 }
  0xaa   : > { %412 = vadd.xlane.f32.xlu1 %v2725_v26 }
  0xae   : > { %414 = vadd.xlane.f32.xlu1 %v2729_v27 }
  0xb2   : > { %416 = vadd.xlane.f32.xlu1 %v2733_v28 }
  0xb6   : > { %418 = vadd.xlane.f32.xlu1 %v2737_v29 }
  0xba   : > { %420 = vadd.xlane.f32.xlu1 %v2741_v30 }
  0xbe   : > { %422 = vadd.xlane.f32.xlu1 %v2745_v31 }
  0xf7   : > { %v365_v50 = vpop.xlane.xlu1 %364  ;;  %v361_v51 = vpop.xlane.xlu0 %360 }
  0xf8   : > { %v425_v52 = vmul.f32 0.0078125, %v361_v51  ;;  %v427_v53 = vmul.f32 0.0078125, %v365_v50  ;;  %v810_v50 = vld [vmem:[#allocation5 + $0x98] sm:$0xff] }
  0xfa   : > { %v2749_v54 = vsub.f32 %v2624_v1, %v425_v52  ;;  %v2754_v59 = vsub.f32 %v2621_v0, %v427_v53  ;;  %v1853_v53 = vpack.c.bf16 %v810_v50, %v808_v49  ;;  %v817_v49 = vld [vmem:[#allocation5 + $0xd0] sm:$0xff] }
  0xfb   : > { %v367_v55 = vpop.xlane.xlu1 %366  ;;  %v363_v56 = vpop.xlane.xlu0 %362 }
  0xfc   : > { %v426_v57 = vmul.f32 0.0078125, %v363_v56  ;;  %v489_v58 = vmul.f32 %v2749_v54, %v2749_v54  ;;  %v428_v60 = vmul.f32 0.0078125, %v367_v55  ;;  %v491_v33 = vmul.f32 %v2754_v59, %v2754_v59  ;;  %v807_v55 = vld [vmem:[#allocation5 + $0x80] sm:$0xff]  ;;  %v809_v56 = vld [vmem:[#allocation5 + $0x90] sm:$0xff] }
  0xfe   : > { %v2757_v61 = vsub.f32 %v2632_v3, %v426_v57  ;;  %521 = vadd.xlane.f32.xlu0 %v489_v58  ;;  %v2762_v32 = vsub.f32 %v2629_v2, %v428_v60  ;;  %v1855_v58 = vpack.c.bf16 %v809_v56, %v807_v55  ;;  %v820_v56 = vld [vmem:[#allocation5 + $0xe8] sm:$0xff] }
  0xff   : > { %v371_v62 = vpop.xlane.xlu1 %370  ;;  %v369_v63 = vpop.xlane.xlu0 %368 }
 0x100   : > { %v490_v1 = vmul.f32 %v2757_v61, %v2757_v61  ;;  %v429_v34 = vmul.f32 0.0078125, %v369_v63  ;;  %v430_v35 = vmul.f32 0.0078125, %v371_v62  ;;  %v492_v36 = vmul.f32 %v2762_v32, %v2762_v32 }
 0x102   : > { %523 = vadd.xlane.f32.xlu0 %v490_v1  ;;  %v2767_v3 = vsub.f32 %v2640_v5, %v429_v34  ;;  %v2772_v39 = vsub.f32 %v2637_v4, %v430_v35  ;;  %v803_v5 = vld [vmem:[#allocation5 + $0x60] sm:$0xff]  ;;  %v812_v1 = vld [vmem:[#allocation5 + $0xa8] sm:$0xff] }
 0x103   : > { %v375_v0 = vpop.xlane.xlu1 %374  ;;  %v373_v38 = vpop.xlane.xlu0 %372  ;;  %v1851_v46 = vpack.c.bf16 %v805_v45, %v803_v5  ;;  %v811_v35 = vld [vmem:[#allocation5 + $0xa0] sm:$0xff]  ;;  %v816_v5 = vld [vmem:[#allocation5 + $0xc8] sm:$0xff]  ;;  %v818_v45 = vld [vmem:[#allocation5 + $0xd8] sm:$0xff] }
 0x104   : > { %v493_v2 = vmul.f32 %v2767_v3, %v2767_v3  ;;  %v431_v40 = vmul.f32 0.0078125, %v373_v38  ;;  %v432_v47 = vmul.f32 0.0078125, %v375_v0  ;;  %v494_v4 = vmul.f32 %v2772_v39, %v2772_v39 }
 0x105   : > { %1852 = vmatpush1.bf16.msra.mxu0 %v1851_v46 }
 0x106   : > { %525 = vadd.xlane.f32.xlu0 %v491_v33  ;;  %v2779_v48 = vsub.f32 %v2648_v7, %v431_v40  ;;  %1854 = vmatprep.subr.bf16.mxu0 %v1853_v53  ;;  %v2784_v60 = vsub.f32 %v2645_v6, %v432_v47  ;;  %v814_v33 = vld [vmem:[#allocation5 + $0xb8] sm:$0xff]  ;;  %v1861_v47 = vpack.c.bf16 %v818_v45, %v816_v5 }
 0x107   : > { %v379_v37 = vpop.xlane.xlu1 %378  ;;  %v377_v52 = vpop.xlane.xlu0 %376  ;;  %v1857_v0 = vpack.c.bf16 %v814_v33, %v812_v1  ;;  %v821_v1 = vld [vmem:[#allocation5 + $0xf0] sm:$0xff] }
 0x108   : > { %v495_v62 = vmul.f32 %v2779_v48, %v2779_v48  ;;  %v433_v63 = vmul.f32 0.0078125, %v377_v52  ;;  %v434_v40 = vmul.f32 0.0078125, %v379_v37  ;;  %v496_v44 = vmul.f32 %v2784_v60, %v2784_v60 }
 0x109   : > { %1856 = vmatpush1.bf16.msra.mxu0 %v1855_v58 }
 0x10a   : > { %527 = vadd.xlane.f32.xlu0 %v492_v36  ;;  %v813_v36 = vld [vmem:[#allocation5 + $0xb0] sm:$0xff]  ;;  %1858 = vmatprep.subr.bf16.mxu0 %v1857_v0  ;;  %v2797_v42 = vsub.f32 %v2656_v9, %v433_v63  ;;  %v2804_v9 = vsub.f32 %v2653_v8, %v434_v40  ;;  %v819_v63 = vld [vmem:[#allocation5 + $0xe0] sm:$0xff] }
 0x10b   : > { %v2776_v43 = vpop.xlane.xlu1 %382 }
 0x10c   : > { %v497_v53 = vmul.f32 %v2797_v42, %v2797_v42 }
 0x10e   : > { %529 = vadd.xlane.f32.xlu0 %v493_v2  ;;  %v381_v2 = vpop.xlane.xlu0 %380 }
 0x10f   : > { %v387_v51 = vpop.xlane.xlu1 %386  ;;  %v435_v55 = vmul.f32 0.0078125, %v381_v2 }
 0x110   : > { %v438_v57 = vmul.f32 0.0078125, %v387_v51 }
 0x112   : > { %v2787_v7 = vsub.f32 %v2669_v12, %v438_v57  ;;  %531 = vadd.xlane.f32.xlu0 %v494_v4  ;;  %v1859_v12 = vpack.c.bf16 %v813_v36, %v811_v35  ;;  %v815_v4 = vld [vmem:[#allocation5 + $0xc0] sm:$0xff]  ;;  %v385_v37 = vpop.xlane.xlu0 %384  ;;  %v822_v57 = vld [vmem:[#allocation5 + $0xf8] sm:$0xff]  ;;  %v2818_v35 = vsub.f32 %v2664_v11, %v435_v55  ;;  %v498_v36 = vmul.f32 %v2804_v9, %v2804_v9 }
 0x113   : > { %v391_v34 = vpop.xlane.xlu1 %390  ;;  %v1863_v51 = vpack.c.bf16 %v817_v49, %v815_v4 }
 0x114   : > { %v440_v38 = vmul.f32 0.0078125, %v391_v34  ;;  %v502_v6 = vmul.f32 %v2787_v7, %v2787_v7  ;;  %1860 = vmatpush1.bf16.msra.mxu0 %v1859_v12  ;;  %v436_v34 = vmul.f32 0.0078125, %v2776_v43  ;;  %v2381_v12 = vmov 0.0  }
 0x115   : > { %1862 = vmatprep.subr.bf16.mxu0 %v1861_v47  ;;  %899 = vmatprep.mubr.f32.mxu0 %v2381_v12  ;;  %v499_v11 = vmul.f32 %v2818_v35, %v2818_v35  ;;  %v437_v43 = vmul.f32 0.0078125, %v385_v37 }
 0x116   : > { %v2794_v41 = vsub.f32 %v2677_v14, %v440_v38  ;;  %547 = vadd.xlane.f32.xlu1 %v502_v6  ;;  %533 = vadd.xlane.f32.xlu0 %v495_v62  ;;  %v1865_v62 = vpack.c.bf16 %v822_v57, %v820_v56  ;;  %v389_v6 = vpop.xlane.xlu0 %388 }
 0x117   : > { %v395_v46 = vpop.xlane.xlu1 %394  ;;  %v439_v47 = vmul.f32 0.0078125, %v389_v6 }
 0x118   : > { %v442_v50 = vmul.f32 0.0078125, %v395_v46  ;;  %v504_v14 = vmul.f32 %v2794_v41, %v2794_v41  ;;  %1864 = vmatpush1.bf16.msra.mxu0 %v1863_v51  ;;  %v2834_v46 = vsub.f32 %v2672_v13, %v437_v43 }
 0x119   : > { %1866 = vmatprep.subr.bf16.mxu0 %v1865_v62 }
 0x11a   : > { %v2807_v52 = vsub.f32 %v2685_v16, %v442_v50  ;;  %551 = vadd.xlane.f32.xlu1 %v504_v14  ;;  %535 = vadd.xlane.f32.xlu0 %v496_v44  ;;  %v1867_v16 = vpack.c.bf16 %v821_v1, %v819_v63  ;;  %v393_v5 = vpop.xlane.xlu0 %392  ;;  %v2841_v50 = vsub.f32 %v2680_v15, %v439_v47 }
 0x11b   : > { %v399_v58 = vpop.xlane.xlu1 %398  ;;  %v441_v14 = vmul.f32 0.0078125, %v393_v5 }
 0x11c   : > { %v444_v33 = vmul.f32 0.0078125, %v399_v58  ;;  %v506_v8 = vmul.f32 %v2807_v52, %v2807_v52  ;;  %1868 = vmatpush1.bf16.msra.mxu0 %v1867_v16  ;;  %v503_v56 = vmul.f32 %v2841_v50, %v2841_v50 }
 0x11d   : > { %v2849_v55 = vsub.f32 %v2688_v17, %v441_v14 }
 0x11e   : > { %v2815_v0 = vsub.f32 %v2693_v18, %v444_v33  ;;  %555 = vadd.xlane.f32.xlu1 %v506_v8  ;;  %537 = vadd.xlane.f32.xlu0 %v497_v53  ;;  %v2826_v18 = vsub.f32 %v2661_v10, %v436_v34  ;;  %v397_v13 = vpop.xlane.xlu0 %396 }
 0x11f   : > { %v401_v38 = vpop.xlane.xlu1 %400  ;;  %v443_v57 = vmul.f32 0.0078125, %v397_v13 }
 0x120   : > { %v508_v2 = vmul.f32 %v2815_v0, %v2815_v0  ;;  %v500_v10 = vmul.f32 %v2826_v18, %v2826_v18  ;;  %v445_v62 = vmul.f32 0.0078125, %v401_v38 }
 0x121   : > { %v2856_v63 = vsub.f32 %v2696_v19, %v443_v57 }
 0x122   : > { %559 = vadd.xlane.f32.xlu1 %v508_v2  ;;  %539 = vadd.xlane.f32.xlu0 %v498_v36  ;;  %v2861_v33 = vsub.f32 %v2701_v20, %v445_v62 }
 0x123   : > { %v403_v40 = vpop.xlane.xlu1 %402  ;;  %v507_v34 = vmul.f32 %v2856_v63, %v2856_v63 }
 0x124   : > { %v446_v44 = vmul.f32 0.0078125, %v403_v40  ;;  %v509_v20 = vmul.f32 %v2861_v33, %v2861_v33 }
 0x126   : > { %v2831_v45 = vsub.f32 %v2705_v21, %v446_v44  ;;  %541 = vadd.xlane.f32.xlu0 %v499_v11  ;;  %v501_v21 = vmul.f32 %v2834_v46, %v2834_v46 }
 0x127   : > { %v405_v4 = vpop.xlane.xlu1 %404 }
 0x128   : > { %v510_v49 = vmul.f32 %v2831_v45, %v2831_v45  ;;  %v447_v8 = vmul.f32 0.0078125, %v405_v4 }
 0x12a   : > { %563 = vadd.xlane.f32.xlu1 %v510_v49  ;;  %543 = vadd.xlane.f32.xlu0 %v500_v10  ;;  %v2871_v38 = vsub.f32 %v2709_v22, %v447_v8 }
 0x12b   : > { %v407_v37 = vpop.xlane.xlu1 %406 }
 0x12c   : > { %v448_v51 = vmul.f32 0.0078125, %v407_v37  ;;  %v511_v22 = vmul.f32 %v2871_v38, %v2871_v38 }
 0x12e   : > { %v2846_v53 = vsub.f32 %v2713_v23, %v448_v51  ;;  %545 = vadd.xlane.f32.xlu0 %v501_v21  ;;  %v505_v23 = vmul.f32 %v2849_v55, %v2849_v55 }
 0x12f   : > { %v409_v15 = vpop.xlane.xlu1 %408 }
 0x130   : > { %v512_v58 = vmul.f32 %v2846_v53, %v2846_v53  ;;  %v449_v6 = vmul.f32 0.0078125, %v409_v15 }
 0x132   : > { %567 = vadd.xlane.f32.xlu1 %v512_v58  ;;  %549 = vadd.xlane.f32.xlu0 %v503_v56  ;;  %v2876_v11 = vsub.f32 %v2717_v24, %v449_v6 }
 0x133   : > { %v411_v1 = vpop.xlane.xlu1 %410 }
 0x134   : > { %v450_v17 = vmul.f32 0.0078125, %v411_v1  ;;  %v513_v24 = vmul.f32 %v2876_v11, %v2876_v11 }
 0x136   : > { %v2864_v16 = vsub.f32 %v2721_v25, %v450_v17  ;;  %553 = vadd.xlane.f32.xlu0 %v505_v23 }
 0x137   : > { %v413_v36 = vpop.xlane.xlu1 %412 }
 0x138   : > { %v514_v19 = vmul.f32 %v2864_v16, %v2864_v16  ;;  %v451_v43 = vmul.f32 0.0078125, %v413_v36 }
 0x13a   : > { %571 = vadd.xlane.f32.xlu1 %v514_v19  ;;  %557 = vadd.xlane.f32.xlu0 %v507_v34  ;;  %v2886_v10 = vsub.f32 %v2725_v26, %v451_v43 }
 0x13b   : > { %v415_v2 = vpop.xlane.xlu1 %414 }
 0x13c   : > { %v452_v25 = vmul.f32 0.0078125, %v415_v2  ;;  %v515_v14 = vmul.f32 %v2886_v10, %v2886_v10 }
 0x13e   : > { %v2879_v40 = vsub.f32 %v2729_v27, %v452_v25  ;;  %561 = vadd.xlane.f32.xlu0 %v509_v20  ;;  %v2915_v25 = vld [vmem:[%s3461_s1] ss:$0 sm:$0xff] }
 0x13f   : > { %v417_v44 = vpop.xlane.xlu1 %416 }
 0x140   : > { %v516_v5 = vmul.f32 %v2879_v40, %v2879_v40  ;;  %v453_v47 = vmul.f32 0.0078125, %v417_v44 }
 0x142   : > { %575 = vadd.xlane.f32.xlu1 %v516_v5  ;;  %565 = vadd.xlane.f32.xlu0 %v511_v22  ;;  %v2891_v49 = vsub.f32 %v2733_v28, %v453_v47  ;;  %v2921_v5 = vld [vmem:[%s3462_s2] ss:$0 sm:$0xff] }
 0x143   : > { %v419_v4 = vpop.xlane.xlu1 %418 }
 0x144   : > { %v454_v27 = vmul.f32 0.0078125, %v419_v4  ;;  %v517_v28 = vmul.f32 %v2891_v49, %v2891_v49 }
 0x146   : > { %v2894_v21 = vsub.f32 %v2737_v29, %v454_v27  ;;  %569 = vadd.xlane.f32.xlu0 %v513_v24 }
 0x147   : > { %v421_v26 = vpop.xlane.xlu1 %420 }
 0x148   : > { %v455_v37 = vmul.f32 0.0078125, %v421_v26  ;;  %v518_v13 = vmul.f32 %v2894_v21, %v2894_v21 }
 0x14a   : > { %v2901_v51 = vsub.f32 %v2741_v30, %v455_v37  ;;  %579 = vadd.xlane.f32.xlu1 %v518_v13  ;;  %573 = vadd.xlane.f32.xlu0 %v515_v14  ;;  %v1412_v37 = vld [vmem:[#allocation7] sm:$0xff]  ;;  %v1413_v13 = vld [vmem:[#allocation7 + $0x8] sm:$0xff] }
 0x14b   : > { %v423_v56 = vpop.xlane.xlu1 %422 }
 0x14c   : > { %v456_v29 = vmul.f32 0.0078125, %v423_v56  ;;  %v519_v15 = vmul.f32 %v2901_v51, %v2901_v51  ;;  %v2382_v56 = vmov 0.0|0.0  }
 0x14d   : > { %1869 = vmatprep.subr.bf16.mxu0 %v2382_v56  ;;  %1917 = vmatprep.subr.bf16.mxu1 %v2382_v56 }
 0x14e   : > { %v2906_v57 = vsub.f32 %v2745_v31, %v456_v29  ;;  %577 = vadd.xlane.f32.xlu0 %v517_v28  ;;  %v1414_v28 = vld [vmem:[#allocation7 + $0x10] sm:$0xff]  ;;  %v1870_v29 = vpack.c.bf16 %v1413_v13, %v1412_v37  ;;  %v1420_v13 = vld [vmem:[#allocation7 + $0x40] sm:$0xff] }
 0x150   : > { %v520_v58 = vmul.f32 %v2906_v57, %v2906_v57  ;;  %1933 = vmatpush1.bf16.msra.mxu1 %v1870_v29 }
 0x151   : > { %1918 = vmatprep.subr.bf16.mxu1 %v2382_v56 }
 0x152   : > { %583 = vadd.xlane.f32.xlu1 %v520_v58  ;;  %581 = vadd.xlane.f32.xlu0 %v519_v15  ;;  %v1415_v15 = vld [vmem:[#allocation7 + $0x18] sm:$0xff] }
 0x18b   : > { %v522_v30 = vpop.xlane.xlu0 %521 }
 0x18c   : > { %v585_v62 = vmul.f32 0.0078125, %v522_v30 }
 0x18e   : > { %v617_v23 = vadd.f32 1e-05, %v585_v62 }
 0x18f   : > { %v524_v1 = vpop.xlane.xlu0 %523 }
 0x190   : > { %2024 = vrsqrt.f32 %v617_v23  ;;  %v586_v17 = vmul.f32 0.0078125, %v524_v1 }
 0x192   : > { %v618_v8 = vadd.f32 1e-05, %v586_v17 }
 0x193   : > { %v526_v34 = vpop.xlane.xlu0 %525 }
 0x194   : > { %2026 = vrsqrt.f32 %v618_v8  ;;  %v587_v31 = vmul.f32 0.0078125, %v526_v34  ;;  %v1416_v8 = vld [vmem:[#allocation7 + $0x20] sm:$0xff]  ;;  %v1417_v34 = vld [vmem:[#allocation7 + $0x28] sm:$0xff] }
 0x196   : > { %v619_v36 = vadd.f32 1e-05, %v587_v31 }
 0x197   : > { %v528_v19 = vpop.xlane.xlu0 %527 }
 0x198   : > { %2028 = vrsqrt.f32 %v619_v36  ;;  %v588_v6 = vmul.f32 0.0078125, %v528_v19 }
 0x19a   : > { %v2025_v20 = vpop.eup %2024  ;;  %v620_v2 = vadd.f32 1e-05, %v588_v6 }
 0x19b   : > { %v530_v43 = vpop.xlane.xlu0 %529  ;;  %v681_v22 = vmul.f32 %v2025_v20, %v2749_v54  ;;  %v1876_v20 = vpack.c.bf16 %v1417_v34, %v1416_v8 }
 0x19c   : > { %2030 = vrsqrt.f32 %v620_v2  ;;  %v589_v44 = vmul.f32 0.0078125, %v530_v43 }
 0x19d   : > { %v720_v47 = vmul.f32 %v2915_v25, %v681_v22  ;;  %v1418_v22 = vld [vmem:[#allocation7 + $0x30] sm:$0xff] }
 0x19e   : > { %v2027_v24 = vpop.eup %2026  ;;  %v621_v4 = vadd.f32 1e-05, %v589_v44  ;;  %v1419_v44 = vld [vmem:[#allocation7 + $0x38] sm:$0xff] }
 0x19f   : > { %v532_v27 = vpop.xlane.xlu0 %531  ;;  %v759_v14 = vadd.f32 %v2921_v5, %v720_v47  ;;  %v682_v26 = vmul.f32 %v2027_v24, %v2757_v61  ;;  %v1873_v61 = vpack.c.bf16 %v1415_v15, %v1414_v28  ;;  %v1421_v28 = vld [vmem:[#allocation7 + $0x48] sm:$0xff] }
 0x1a0   : > { %2032 = vrsqrt.f32 %v621_v4  ;;  %v590_v54 = vmul.f32 0.0078125, %v532_v27 }
 0x1a1   : > { %900 = vmatmul.mubr.f32.vlgmr.msra.gmra.mrb[0].mxu0 %v759_v14  ;;  %v721_v58 = vmul.f32 %v2915_v25, %v682_v26  ;;  %1934 = vmatpush1.bf16.msra.mxu1 %v1873_v61  ;;  %v1879_v14 = vpack.c.bf16 %v1419_v44, %v1418_v22 }
 0x1a2   : > { %v2029_v30 = vpop.eup %2028  ;;  %v622_v62 = vadd.f32 1e-05, %v590_v54  ;;  %905 = vmatprep.mubr.f32.mxu0 %v2381_v12  ;;  %1871 = vmatpush1.bf16.msra.mxu0 %v1870_v29 }
 0x1a3   : > { %v534_v23 = vpop.xlane.xlu0 %533  ;;  %v760_v1 = vadd.f32 %v2921_v5, %v721_v58  ;;  %v683_v17 = vmul.f32 %v2029_v30, %v2754_v59  ;;  %1872 = vmatprep.subr.bf16.mxu0 %v2382_v56  ;;  %1919 = vmatprep.subr.bf16.mxu1 %v2382_v56  ;;  %v1882_v30 = vpack.c.bf16 %v1421_v28, %v1420_v13 }
 0x1a4   : > { %2034 = vrsqrt.f32 %v622_v62  ;;  %v591_v31 = vmul.f32 0.0078125, %v534_v23  ;;  %v1422_v23 = vld [vmem:[#allocation7 + $0x50] sm:$0xff] }
 0x1a5   : > { %906 = vmatmul.mubr.f32.gmra.mrb[2].mxu0 %v760_v1  ;;  %v722_v36 = vmul.f32 %v2915_v25, %v683_v17  ;;  %1935 = vmatpush1.bf16.msra.mxu1 %v1876_v20  ;;  %v1423_v1 = vld [vmem:[#allocation7 + $0x58] sm:$0xff] }
 0x1a6   : > { %v2031_v19 = vpop.eup %2030  ;;  %v623_v6 = vadd.f32 1e-05, %v591_v31  ;;  %911 = vmatprep.mubr.f32.mxu0 %v2381_v12  ;;  %1874 = vmatpush1.bf16.msra.mxu0 %v1873_v61  ;;  %v1885_v31 = vpack.c.bf16 %v1423_v1, %v1422_v23 }
 0x1a7   : > { %v536_v2 = vpop.xlane.xlu0 %535  ;;  %v761_v59 = vadd.f32 %v2921_v5, %v722_v36  ;;  %v684_v43 = vmul.f32 %v2031_v19, %v2762_v32  ;;  %1875 = vmatprep.subr.bf16.mxu0 %v2382_v56  ;;  %1920 = vmatprep.subr.bf16.mxu1 %v2382_v56 }
 0x1a8   : > { %v592_v47 = vmul.f32 0.0078125, %v536_v2  ;;  %2036 = vrsqrt.f32 %v623_v6  ;;  %v548_v6 = vpop.xlane.xlu1 %547 }
 0x1a9   : > { %912 = vmatmul.mubr.f32.gmra.mrb[4].mxu0 %v761_v59  ;;  %v723_v24 = vmul.f32 %v2915_v25, %v684_v43  ;;  %1936 = vmatpush1.bf16.msra.mxu1 %v1879_v14  ;;  %v1424_v59 = vld [vmem:[#allocation7 + $0x60] sm:$0xff]  ;;  %v1425_v43 = vld [vmem:[#allocation7 + $0x68] sm:$0xff] }
 0x1aa   : > { %v2033_v4 = vpop.eup %2032  ;;  %v624_v27 = vadd.f32 1e-05, %v592_v47  ;;  %917 = vmatprep.mubr.f32.mxu0 %v2381_v12  ;;  %1877 = vmatpush1.bf16.msra.mxu0 %v1876_v20 }
 0x1ab   : > { %v538_v26 = vpop.xlane.xlu0 %537  ;;  %v762_v32 = vadd.f32 %v2921_v5, %v723_v24  ;;  %v685_v37 = vmul.f32 %v2033_v4, %v2767_v3  ;;  %1878 = vmatprep.subr.bf16.mxu0 %v2382_v56  ;;  %1921 = vmatprep.subr.bf16.mxu1 %v2382_v56  ;;  %v598_v24 = vmul.f32 0.0078125, %v548_v6  ;;  %v1430_v6 = vld [vmem:[#allocation7 + $0x90] sm:$0xff] }
 0x1ac   : > { %v593_v54 = vmul.f32 0.0078125, %v538_v26  ;;  %2038 = vrsqrt.f32 %v624_v27  ;;  %v1888_v27 = vpack.c.bf16 %v1425_v43, %v1424_v59 }
 0x1ad   : > { %918 = vmatmul.mubr.f32.gmra.mrb[6].mxu0 %v762_v32  ;;  %v724_v29 = vmul.f32 %v2915_v25, %v685_v37  ;;  %1937 = vmatpush1.bf16.msra.mxu1 %v1882_v30  ;;  %v1426_v32 = vld [vmem:[#allocation7 + $0x70] sm:$0xff]  ;;  %v1427_v37 = vld [vmem:[#allocation7 + $0x78] sm:$0xff] }
 0x1ae   : > { %v2035_v15 = vpop.eup %2034  ;;  %v625_v58 = vadd.f32 1e-05, %v593_v54  ;;  %923 = vmatprep.mubr.f32.mxu0 %v2381_v12  ;;  %1880 = vmatpush1.bf16.msra.mxu0 %v1879_v14  ;;  %v630_v54 = vadd.f32 1e-05, %v598_v24 }
 0x1af   : > { %v540_v62 = vpop.xlane.xlu0 %539  ;;  %v763_v3 = vadd.f32 %v2921_v5, %v724_v29  ;;  %v686_v61 = vmul.f32 %v2035_v15, %v2772_v39  ;;  %1881 = vmatprep.subr.bf16.mxu0 %v2382_v56  ;;  %1922 = vmatprep.subr.bf16.mxu1 %v2382_v56 }
 0x1b0   : > { %v594_v17 = vmul.f32 0.0078125, %v540_v62  ;;  %2040 = vrsqrt.f32 %v625_v58  ;;  %v1891_v62 = vpack.c.bf16 %v1427_v37, %v1426_v32 }
 0x1b1   : > { %924 = vmatmul.mubr.f32.gmra.mrb[8].mxu0 %v763_v3  ;;  %v725_v8 = vmul.f32 %v2915_v25, %v686_v61  ;;  %1938 = vmatpush1.bf16.msra.mxu1 %v1885_v31  ;;  %v1428_v3 = vld [vmem:[#allocation7 + $0x80] sm:$0xff]  ;;  %v552_v61 = vpop.xlane.xlu1 %551 }
 0x1b2   : > { %v626_v34 = vadd.f32 1e-05, %v594_v17  ;;  %929 = vmatprep.mubr.f32.mxu0 %v2381_v12  ;;  %1883 = vmatpush1.bf16.msra.mxu0 %v1882_v30  ;;  %v2037_v36 = vpop.eup %2036 }
 0x1b3   : > { %v542_v19 = vpop.xlane.xlu0 %541  ;;  %v764_v39 = vadd.f32 %v2921_v5, %v725_v8  ;;  %1884 = vmatprep.subr.bf16.mxu0 %v2382_v56  ;;  %v687_v2 = vmul.f32 %v2037_v36, %v2779_v48  ;;  %1923 = vmatprep.subr.bf16.mxu1 %v2382_v56 }
 0x1b4   : > { %v595_v20 = vmul.f32 0.0078125, %v542_v19  ;;  %2042 = vrsqrt.f32 %v626_v34 }
 0x1b5   : > { %930 = vmatmul.mubr.f32.gmra.mrb[10].mxu0 %v764_v39  ;;  %v726_v44 = vmul.f32 %v2915_v25, %v687_v2  ;;  %1939 = vmatpush1.bf16.msra.mxu1 %v1888_v27 }
 0x1b6   : > { %v627_v22 = vadd.f32 1e-05, %v595_v20  ;;  %935 = vmatprep.mubr.f32.mxu0 %v2381_v12  ;;  %1886 = vmatpush1.bf16.msra.mxu0 %v1885_v31  ;;  %v2039_v47 = vpop.eup %2038  ;;  %v600_v31 = vmul.f32 0.0078125, %v552_v61  ;;  %v1431_v20 = vld [vmem:[#allocation7 + $0x98] sm:$0xff] }
 0x1b7   : > { %v544_v4 = vpop.xlane.xlu0 %543  ;;  %1887 = vmatprep.subr.bf16.mxu0 %v2382_v56  ;;  %v765_v14 = vadd.f32 %v2921_v5, %v726_v44  ;;  %v688_v26 = vmul.f32 %v2039_v47, %v2784_v60  ;;  %v1429_v60 = vld [vmem:[#allocation7 + $0x88] sm:$0xff]  ;;  %1924 = vmatprep.subr.bf16.mxu1 %v2382_v56 }
 0x1b8   : > { %2044 = vrsqrt.f32 %v627_v22  ;;  %v596_v48 = vmul.f32 0.0078125, %v544_v4  ;;  %v632_v47 = vadd.f32 1e-05, %v600_v31  ;;  %v1432_v4 = vld [vmem:[#allocation7 + $0xa0] sm:$0xff] }
 0x1b9   : > { %936 = vmatmul.mubr.f32.gmra.mrb[12].mxu0 %v765_v14  ;;  %v727_v15 = vmul.f32 %v2915_v25, %v688_v26  ;;  %1940 = vmatpush1.bf16.msra.mxu1 %v1891_v62 }
 0x1ba   : > { %v628_v13 = vadd.f32 1e-05, %v596_v48  ;;  %v2041_v28 = vpop.eup %2040  ;;  %941 = vmatprep.mubr.f32.mxu0 %v2381_v12  ;;  %1889 = vmatpush1.bf16.msra.mxu0 %v1888_v27  ;;  %v1433_v27 = vld [vmem:[#allocation7 + $0xa8] sm:$0xff]  ;;  %v556_v48 = vpop.xlane.xlu1 %555 }
 0x1bb   : > { %v546_v29 = vpop.xlane.xlu0 %545  ;;  %v689_v30 = vmul.f32 %v2041_v28, %v2797_v42  ;;  %1890 = vmatprep.subr.bf16.mxu0 %v2382_v56  ;;  %v766_v23 = vadd.f32 %v2921_v5, %v727_v15  ;;  %v1894_v42 = vpack.c.bf16 %v1429_v60, %v1428_v3  ;;  %1925 = vmatprep.subr.bf16.mxu1 %v2382_v56 }
 0x1bc   : > { %v597_v58 = vmul.f32 0.0078125, %v546_v29  ;;  %2046 = vrsqrt.f32 %v628_v13  ;;  %v1900_v37 = vpack.c.bf16 %v1433_v27, %v1432_v4  ;;  %v602_v13 = vmul.f32 0.0078125, %v556_v48 }
 0x1bd   : > { %v728_v17 = vmul.f32 %v2915_v25, %v689_v30  ;;  %2048 = vrsqrt.f32 %v630_v54  ;;  %942 = vmatmul.mubr.f32.gmra.mrb[14].mxu0 %v766_v23  ;;  %1941 = vmatpush1.bf16.msra.mxu1 %v1894_v42 }
 0x1be   : > { %v629_v1 = vadd.f32 1e-05, %v597_v58  ;;  %v2043_v8 = vpop.eup %2042  ;;  %947 = vmatprep.mubr.f32.mxu0 %v2381_v12  ;;  %1892 = vmatpush1.bf16.msra.mxu0 %v1891_v62  ;;  %v634_v3 = vadd.f32 1e-05, %v602_v13  ;;  %v560_v61 = vpop.xlane.xlu1 %559 }
 0x1bf   : > { %v550_v34 = vpop.xlane.xlu0 %549  ;;  %v767_v19 = vadd.f32 %v2921_v5, %v728_v17  ;;  %v690_v39 = vmul.f32 %v2043_v8, %v2804_v9  ;;  %1893 = vmatprep.subr.bf16.mxu0 %v2382_v56  ;;  %v1897_v9 = vpack.c.bf16 %v1431_v20, %v1430_v6  ;;  %1926 = vmatprep.subr.bf16.mxu1 %v2382_v56  ;;  %v604_v8 = vmul.f32 0.0078125, %v560_v61 }
 0x1c0   : > { %2050 = vrsqrt.f32 %v629_v1  ;;  %v599_v36 = vmul.f32 0.0078125, %v550_v34 }
 0x1c1   : > { %948 = vmatmul.mubr.f32.gmra.mrb[16].mxu0 %v767_v19  ;;  %v729_v22 = vmul.f32 %v2915_v25, %v690_v39  ;;  %1942 = vmatpush1.bf16.msra.mxu1 %v1897_v9  ;;  %v636_v19 = vadd.f32 1e-05, %v604_v8 }
 0x1c2   : > { %v2045_v2 = vpop.eup %2044  ;;  %v631_v59 = vadd.f32 1e-05, %v599_v36  ;;  %953 = vmatprep.mubr.f32.mxu0 %v2381_v12  ;;  %1895 = vmatpush1.bf16.msra.mxu0 %v1894_v42  ;;  %v564_v6 = vpop.xlane.xlu1 %563 }
 0x1c3   : > { %v554_v43 = vpop.xlane.xlu0 %553  ;;  %v691_v44 = vmul.f32 %v2045_v2, %v2818_v35  ;;  %v768_v14 = vadd.f32 %v2921_v5, %v729_v22  ;;  %1896 = vmatprep.subr.bf16.mxu0 %v2382_v56  ;;  %1927 = vmatprep.subr.bf16.mxu1 %v2382_v56  ;;  %v606_v22 = vmul.f32 0.0078125, %v564_v6 }
 0x1c4   : > { %v601_v24 = vmul.f32 0.0078125, %v554_v43  ;;  %2052 = vrsqrt.f32 %v631_v59 }
 0x1c5   : > { %v730_v26 = vmul.f32 %v2915_v25, %v691_v44  ;;  %954 = vmatmul.mubr.f32.gmra.mrb[18].mxu0 %v768_v14  ;;  %2054 = vrsqrt.f32 %v632_v47  ;;  %1943 = vmatpush1.bf16.msra.mxu1 %v1900_v37  ;;  %v638_v27 = vadd.f32 1e-05, %v606_v22 }
 0x1c6   : > { %v2047_v35 = vpop.eup %2046  ;;  %v633_v28 = vadd.f32 1e-05, %v601_v24  ;;  %959 = vmatprep.mubr.f32.mxu0 %v2381_v12  ;;  %1898 = vmatpush1.bf16.msra.mxu0 %v1897_v9 }
 0x1c7   : > { %v769_v32 = vadd.f32 %v2921_v5, %v730_v26  ;;  %v692_v54 = vmul.f32 %v2047_v35, %v2826_v18  ;;  %v2049_v29 = vpop.eup %2048  ;;  %v558_v15 = vpop.xlane.xlu0 %557  ;;  %1899 = vmatprep.subr.bf16.mxu0 %v2382_v56  ;;  %1928 = vmatprep.subr.bf16.mxu1 %v2382_v56 }
 0x1c8   : > { %2056 = vrsqrt.f32 %v633_v28  ;;  %v603_v60 = vmul.f32 0.0078125, %v558_v15  ;;  %v694_v1 = vmul.f32 %v2049_v29, %v2787_v7 }
 0x1c9   : > { %v731_v30 = vmul.f32 %v2915_v25, %v692_v54  ;;  %960 = vmatmul.mubr.f32.gmra.mrb[20].mxu0 %v769_v32  ;;  %2058 = vrsqrt.f32 %v634_v3 }
 0x1ca   : > { %v2051_v58 = vpop.eup %2050  ;;  %965 = vmatprep.mubr.f32.mxu0 %v2381_v12  ;;  %1901 = vmatpush1.bf16.msra.mxu0 %v1900_v37  ;;  %v635_v34 = vadd.f32 1e-05, %v603_v60  ;;  %v733_v31 = vmul.f32 %v2915_v25, %v694_v1 }
 0x1cb   : > { %v693_v62 = vmul.f32 %v2051_v58, %v2834_v46  ;;  %v770_v18 = vadd.f32 %v2921_v5, %v731_v30  ;;  %1902 = vmatprep.subr.bf16.mxu0 %v2382_v56  ;;  %v562_v42 = vpop.xlane.xlu0 %561 }
 0x1cc   : > { %2060 = vrsqrt.f32 %v635_v34  ;;  %v605_v39 = vmul.f32 0.0078125, %v562_v42  ;;  %v772_v20 = vadd.f32 %v2921_v5, %v733_v31 }
 0x1cd   : > { %v732_v23 = vmul.f32 %v2915_v25, %v693_v62  ;;  %966 = vmatmul.mubr.f32.gmra.mrb[22].mxu0 %v770_v18  ;;  %2062 = vrsqrt.f32 %v636_v19 }
 0x1ce   : > { %v2053_v17 = vpop.eup %2052  ;;  %971 = vmatprep.mubr.f32.mxu0 %v2381_v12  ;;  %v637_v44 = vadd.f32 1e-05, %v605_v39 }
 0x1cf   : > { %v771_v46 = vadd.f32 %v2921_v5, %v732_v23  ;;  %v695_v36 = vmul.f32 %v2053_v17, %v2841_v50  ;;  %v2055_v7 = vpop.eup %2054  ;;  %v566_v50 = vpop.xlane.xlu0 %565 }
 0x1d0   : > { %v696_v59 = vmul.f32 %v2055_v7, %v2794_v41  ;;  %2064 = vrsqrt.f32 %v637_v44  ;;  %v607_v48 = vmul.f32 0.0078125, %v566_v50  ;;  %v568_v41 = vpop.xlane.xlu1 %567 }
 0x1d1   : > { %972 = vmatmul.mubr.f32.gmra.mrb[24].mxu0 %v771_v46  ;;  %v734_v2 = vmul.f32 %v2915_v25, %v695_v36  ;;  %2066 = vrsqrt.f32 %v638_v27  ;;  %v608_v37 = vmul.f32 0.0078125, %v568_v41  ;;  %v1435_v27 = vld [vmem:[#allocation7 + $0xb8] sm:$0xff] }
 0x1d2   : > { %977 = vmatprep.mubr.f32.mxu0 %v2381_v12  ;;  %v2057_v43 = vpop.eup %2056  ;;  %v735_v24 = vmul.f32 %v2915_v25, %v696_v59  ;;  %v639_v13 = vadd.f32 1e-05, %v607_v48 }
 0x1d3   : > { %v773_v47 = vadd.f32 %v2921_v5, %v734_v2  ;;  %v697_v9 = vmul.f32 %v2057_v43, %v2849_v55  ;;  %v2059_v4 = vpop.eup %2058  ;;  %v570_v55 = vpop.xlane.xlu0 %569  ;;  %v640_v58 = vadd.f32 1e-05, %v608_v37  ;;  %v1436_v37 = vld [vmem:[#allocation7 + $0xc0] sm:$0xff] }
 0x1d4   : > { %v774_v14 = vadd.f32 %v2921_v5, %v735_v24  ;;  %v698_v35 = vmul.f32 %v2059_v4, %v2807_v52  ;;  %2068 = vrsqrt.f32 %v639_v13  ;;  %v609_v30 = vmul.f32 0.0078125, %v570_v55  ;;  %v572_v52 = vpop.xlane.xlu1 %571  ;;  %v1434_v4 = vld [vmem:[#allocation7 + $0xb0] sm:$0xff]  ;;  %v1437_v13 = vld [vmem:[#allocation7 + $0xc8] sm:$0xff] }
 0x1d5   : > { %978 = vmatmul.mubr.f32.gmra.mrb[26].mxu0 %v772_v20  ;;  %v736_v26 = vmul.f32 %v2915_v25, %v697_v9  ;;  %2070 = vrsqrt.f32 %v640_v58  ;;  %v610_v61 = vmul.f32 0.0078125, %v572_v52  ;;  %v1903_v48 = vpack.c.bf16 %v1435_v27, %v1434_v4  ;;  %v1438_v52 = vld [vmem:[#allocation7 + $0xd0] sm:$0xff] }
 0x1d6   : > { %983 = vmatprep.mubr.f32.mxu0 %v2381_v12  ;;  %v2061_v32 = vpop.eup %2060  ;;  %v737_v54 = vmul.f32 %v2915_v25, %v698_v35  ;;  %v641_v23 = vadd.f32 1e-05, %v609_v30  ;;  %v1906_v55 = vpack.c.bf16 %v1437_v13, %v1436_v37 }
 0x1d7   : > { %v775_v28 = vadd.f32 %v2921_v5, %v736_v26  ;;  %v699_v29 = vmul.f32 %v2061_v32, %v2856_v63  ;;  %v2063_v15 = vpop.eup %2062  ;;  %v574_v63 = vpop.xlane.xlu0 %573  ;;  %v642_v34 = vadd.f32 1e-05, %v610_v61  ;;  %1904 = vmatpush1.bf16.msra.mxu0 %v1903_v48  ;;  %1944 = vmatpush1.bf16.msra.mxu1 %v1903_v48 }
 0x1d8   : > { %v776_v62 = vadd.f32 %v2921_v5, %v737_v54  ;;  %v700_v60 = vmul.f32 %v2063_v15, %v2815_v0  ;;  %2072 = vrsqrt.f32 %v641_v23  ;;  %v611_v42 = vmul.f32 0.0078125, %v574_v63  ;;  %v576_v0 = vpop.xlane.xlu1 %575  ;;  %1905 = vmatprep.subr.bf16.mxu0 %v2382_v56  ;;  %1929 = vmatprep.subr.bf16.mxu1 %v2382_v56 }
 0x1d9   : > { %984 = vmatmul.mubr.f32.gmra.mrb[28].mxu0 %v773_v47  ;;  %v738_v3 = vmul.f32 %v2915_v25, %v699_v29  ;;  %2074 = vrsqrt.f32 %v642_v34  ;;  %v612_v39 = vmul.f32 0.0078125, %v576_v0 }
 0x1da   : > { %989 = vmatprep.mubr.f32.mxu0 %v2381_v12  ;;  %v2065_v18 = vpop.eup %2064  ;;  %v739_v17 = vmul.f32 %v2915_v25, %v700_v60  ;;  %v643_v6 = vadd.f32 1e-05, %v611_v42 }
 0x1db   : > { %v777_v1 = vadd.f32 %v2921_v5, %v738_v3  ;;  %v701_v46 = vmul.f32 %v2065_v18, %v2861_v33  ;;  %v2067_v8 = vpop.eup %2066  ;;  %v578_v33 = vpop.xlane.xlu0 %577  ;;  %v644_v22 = vadd.f32 1e-05, %v612_v39  ;;  %1907 = vmatpush1.bf16.msra.mxu0 %v1906_v55  ;;  %1945 = vmatpush1.bf16.msra.mxu1 %v1906_v55 }
 0x1dc   : > { %v778_v31 = vadd.f32 %v2921_v5, %v739_v17  ;;  %v702_v7 = vmul.f32 %v2067_v8, %v2831_v45  ;;  %2076 = vrsqrt.f32 %v643_v6  ;;  %v613_v44 = vmul.f32 0.0078125, %v578_v33  ;;  %v580_v45 = vpop.xlane.xlu1 %579  ;;  %1908 = vmatprep.subr.bf16.mxu0 %v2382_v56  ;;  %1930 = vmatprep.subr.bf16.mxu1 %v2382_v56  ;;  %v1441_v17 = vld [vmem:[#allocation7 + $0xe8] sm:$0xff] }
 0x1dd   : > { %990 = vmatmul.mubr.f32.gmra.mrb[30].mxu0 %v774_v14  ;;  %v740_v36 = vmul.f32 %v2915_v25, %v701_v46  ;;  %2078 = vrsqrt.f32 %v644_v22 }
 0x1de   : > { %995 = vmatprep.mubr.f32.mxu0 %v2381_v12  ;;  %v2069_v19 = vpop.eup %2068  ;;  %v741_v2 = vmul.f32 %v2915_v25, %v702_v7  ;;  %v645_v41 = vadd.f32 1e-05, %v613_v44 }
 0x1df   : > { %v779_v20 = vadd.f32 %v2921_v5, %v740_v36  ;;  %v703_v59 = vmul.f32 %v2069_v19, %v2871_v38  ;;  %v2071_v43 = vpop.eup %2070  ;;  %v614_v38 = vmul.f32 0.0078125, %v580_v45  ;;  %v582_v14 = vpop.xlane.xlu0 %581  ;;  %v1443_v36 = vld [vmem:[#allocation7 + $0xf8] sm:$0xff] }
 0x1e0   : > { %v780_v50 = vadd.f32 %v2921_v5, %v741_v2  ;;  %v704_v24 = vmul.f32 %v2071_v43, %v2846_v53  ;;  %2080 = vrsqrt.f32 %v645_v41  ;;  %v615_v54 = vmul.f32 0.0078125, %v582_v14  ;;  %v584_v29 = vpop.xlane.xlu1 %583 }
 0x1e1   : > { %996 = vmatmul.mubr.f32.gmra.mrb[32].mxu0 %v775_v28  ;;  %v742_v47 = vmul.f32 %v2915_v25, %v703_v59  ;;  %v646_v28 = vadd.f32 1e-05, %v614_v38  ;;  %v616_v60 = vmul.f32 0.0078125, %v584_v29 }
 0x1e2   : > { %1001 = vmatprep.mubr.f32.mxu0 %v2381_v12  ;;  %v2073_v9 = vpop.eup %2072  ;;  %v743_v35 = vmul.f32 %v2915_v25, %v704_v24  ;;  %v647_v18 = vadd.f32 1e-05, %v615_v54  ;;  %v825_v24 = vlaneseq }
 0x1e3   : > { %v781_v26 = vadd.f32 %v2921_v5, %v742_v47  ;;  %v705_v32 = vmul.f32 %v2073_v9, %v2876_v11  ;;  %v2075_v53 = vpop.eup %2074  ;;  %2082 = vrsqrt.f32 %v646_v28  ;;  %v648_v8 = vadd.f32 1e-05, %v616_v60 }
 0x1e4   : > { %v782_v15 = vadd.f32 %v2921_v5, %v743_v35  ;;  %v706_v58 = vmul.f32 %v2075_v53, %v2864_v16  ;;  %2084 = vrsqrt.f32 %v647_v18  ;;  %v826_v9 = vshrl.u32 %v825_v24, 7 }
 0x1e5   : > { %1002 = vmatmul.mubr.f32.gmra.mrb[34].mxu0 %v776_v62  ;;  %v744_v11 = vmul.f32 %v2915_v25, %v705_v32  ;;  %v1439_v62 = vld [vmem:[#allocation7 + $0xd8] sm:$0xff]  ;;  %2086 = vrsqrt.f32 %v648_v8 }
 0x1e6   : > { %1007 = vmatprep.mubr.f32.mxu0 %v2381_v12  ;;  %v2077_v30 = vpop.eup %2076  ;;  %v1909_v3 = vpack.c.bf16 %v1439_v62, %v1438_v52  ;;  %v745_v16 = vmul.f32 %v2915_v25, %v706_v58  ;;  %v827_v4 = vsub.s32 0, %v826_v9  ;;  %v831_v27 = vsub.s32 1, %v826_v9 }
 0x1e7   : > { %v783_v61 = vadd.f32 %v2921_v5, %v744_v11  ;;  %v707_v23 = vmul.f32 %v2077_v30, %v2886_v10  ;;  %v2079_v63 = vpop.eup %2078 }
 0x1e8   : > { %1910 = vmatpush1.bf16.msra.mxu0 %v1909_v3  ;;  %1946 = vmatpush1.bf16.msra.mxu1 %v1909_v3  ;;  %v784_v34 = vadd.f32 %v2921_v5, %v745_v16  ;;  %v708_v10 = vmul.f32 %v2079_v63, %v2879_v40 }
 0x1e9   : > { %1008 = vmatmul.mubr.f32.gmra.mrb[36].mxu0 %v777_v1  ;;  %1911 = vmatprep.subr.bf16.mxu0 %v2382_v56  ;;  %v1440_v1 = vld [vmem:[#allocation7 + $0xe0] sm:$0xff]  ;;  %v746_v42 = vmul.f32 %v2915_v25, %v707_v23 }
 0x1ea   : > { %1013 = vmatprep.mubr.f32.mxu0 %v2381_v12  ;;  %1931 = vmatprep.subr.bf16.mxu1 %v2382_v56  ;;  %v1912_v46 = vpack.c.bf16 %v1441_v17, %v1440_v1  ;;  %v2081_v0 = vpop.eup %2080  ;;  %v747_v39 = vmul.f32 %v2915_v25, %v708_v10 }
 0x1eb   : > { %v785_v19 = vadd.f32 %v2921_v5, %v746_v42  ;;  %v709_v40 = vmul.f32 %v2081_v0, %v2891_v49 }
 0x1ec   : > { %1913 = vmatpush1.bf16.msra.mxu0 %v1912_v46  ;;  %1947 = vmatpush1.bf16.msra.mxu1 %v1912_v46  ;;  %v786_v33 = vadd.f32 %v2921_v5, %v747_v39 }
 0x1ed   : > { %1014 = vmatmul.mubr.f32.gmra.mrb[38].mxu0 %v778_v31  ;;  %1914 = vmatprep.subr.bf16.mxu0 %v2382_v56  ;;  %v1442_v31 = vld [vmem:[#allocation7 + $0xf0] sm:$0xff]  ;;  %v2083_v6 = vpop.eup %2082 }
 0x1ee   : > { %1019 = vmatprep.mubr.f32.mxu0 %v2381_v12  ;;  %1932 = vmatprep.subr.bf16.mxu1 %v2382_v56  ;;  %v1915_v7 = vpack.c.bf16 %v1443_v36, %v1442_v31  ;;  %v748_v56 = vmul.f32 %v2915_v25, %v709_v40  ;;  %v2085_v2 = vpop.eup %2084 }
 0x1ef   : > { %v711_v43 = vmul.f32 %v2085_v2, %v2901_v51  ;;  %v2087_v22 = vpop.eup %2086 }
 0x1f0   : > { %1916 = vmatpush1.bf16.msra.mxu0 %v1915_v7  ;;  %1948 = vmatpush1.bf16.msra.mxu1 %v1915_v7  ;;  %v787_v59 = vadd.f32 %v2921_v5, %v748_v56 }
 0x1f1   : > { %1020 = vmatmul.mubr.f32.gmra.mrb[40].mxu0 %v779_v20  ;;  %v710_v20 = vmul.f32 %v2083_v6, %v2894_v21  ;;  %v750_v45 = vmul.f32 %v2915_v25, %v711_v43  ;;  %v712_v21 = vmul.f32 %v2087_v22, %v2906_v57  ;;  %v823_v57 = vld [vmem:[%s3464_s4] sm:$0x3] }
 0x1f2   : > { %1025 = vmatprep.mubr.f32.mxu0 %v2381_v12  ;;  %v3084_v48 = vrot.slane %v823_v57, %v827_v4  ;;  %v3086_v38 = vrot.slane %v823_v57, %v831_v27 }
 0x1f3   : > { %v749_v49 = vmul.f32 %v2915_v25, %v710_v20  ;;  %v751_v47 = vmul.f32 %v2915_v25, %v712_v21 }
 0x1f5   : > { %1026 = vmatmul.mubr.f32.gmra.mrb[42].mxu0 %v780_v50  ;;  %v788_v44 = vadd.f32 %v2921_v5, %v749_v49  ;;  %v789_v50 = vadd.f32 %v2921_v5, %v750_v45  ;;  %v790_v51 = vadd.f32 %v2921_v5, %v751_v47 }
 0x1f6   : > { %1031 = vmatprep.mubr.f32.mxu0 %v2381_v12 }
 0x1f9   : > { %1032 = vmatmul.mubr.f32.gmra.mrb[44].mxu0 %v781_v26 }
 0x1fa   : > { %1037 = vmatprep.mubr.f32.mxu0 %v2381_v12 }
 0x1fd   : > { %1038 = vmatmul.mubr.f32.gmra.mrb[46].mxu0 %v782_v15 }
 0x1fe   : > { %1043 = vmatprep.mubr.f32.mxu0 %v2381_v12 }
 0x201   : > { %1044 = vmatmul.mubr.f32.gmra.mrb[48].mxu0 %v783_v61 }
 0x202   : > { %1049 = vmatprep.mubr.f32.mxu0 %v2381_v12 }
 0x205   : > { %1050 = vmatmul.mubr.f32.gmra.mrb[50].mxu0 %v784_v34 }
 0x206   : > { %1055 = vmatprep.mubr.f32.mxu0 %v2381_v12 }
 0x209   : > { %1056 = vmatmul.mubr.f32.gmra.mrb[52].mxu0 %v785_v19 }
 0x20a   : > { %1061 = vmatprep.mubr.f32.mxu0 %v2381_v12 }
 0x20d   : > { %1062 = vmatmul.mubr.f32.gmra.mrb[54].mxu0 %v786_v33 }
 0x20e   : > { %1067 = vmatprep.mubr.f32.mxu0 %v2381_v12 }
 0x211   : > { %1068 = vmatmul.mubr.f32.gmra.mrb[56].mxu0 %v787_v59 }
 0x212   : > { %1073 = vmatprep.mubr.f32.mxu0 %v2381_v12 }
 0x215   : > { %1074 = vmatmul.mubr.f32.gmra.mrb[58].mxu0 %v788_v44 }
 0x216   : > { %1079 = vmatprep.mubr.f32.mxu0 %v2381_v12 }
 0x219   : > { %1080 = vmatmul.mubr.f32.gmra.mrb[60].mxu0 %v789_v50 }
 0x21a   : > { %1085 = vmatprep.mubr.f32.mxu0 %v2381_v12 }
 0x21d   : > { %1086 = vmatmul.mubr.f32.gmra.mrb[62].mxu0 %v790_v51 }
 0x274   : > { %v901_v41 = vpop.f32.mrb[0].mxu0 }
 0x275   : > { %v902_v25 = vadd.f32 %v901_v41, %v3084_v48  ;;  %v903_v14 = vpop.f32.mrb[1].mxu0 }
 0x276   : > { %v904_v12 = vadd.f32 %v903_v14, %v3086_v38 }
 0x277   : > { %v1156_v5 = vmul.f32 0.70710677, %v902_v25  ;;  %v1092_v34 = vmul.f32 0.5, %v902_v25 }
 0x278   : > { %v1157_v26 = vmul.f32 0.70710677, %v904_v12  ;;  %v907_v35 = vpop.f32.mrb[2].mxu0  ;;  %v1093_v1 = vmul.f32 0.5, %v904_v12 }
 0x279   : > { %2088 = verf.f32 %v1156_v5  ;;  %v908_v32 = vadd.f32 %v907_v35, %v3084_v48  ;;  %v909_v53 = vpop.f32.mrb[3].mxu0 }
 0x27a   : > { %2090 = verf.f32 %v1157_v26  ;;  %v910_v37 = vadd.f32 %v909_v53, %v3086_v38 }
 0x27b   : > { %v1158_v13 = vmul.f32 0.70710677, %v908_v32  ;;  %v1094_v2 = vmul.f32 0.5, %v908_v32 }
 0x27c   : > { %v1159_v55 = vmul.f32 0.70710677, %v910_v37  ;;  %v913_v28 = vpop.f32.mrb[4].mxu0  ;;  %v1095_v6 = vmul.f32 0.5, %v910_v37 }
 0x27d   : > { %2092 = verf.f32 %v1158_v13  ;;  %v914_v54 = vadd.f32 %v913_v28, %v3084_v48  ;;  %v915_v29 = vpop.f32.mrb[5].mxu0 }
 0x27e   : > { %2094 = verf.f32 %v1159_v55  ;;  %v916_v15 = vadd.f32 %v915_v29, %v3086_v38 }
 0x27f   : > { %v1160_v11 = vmul.f32 0.70710677, %v914_v54  ;;  %v1096_v9 = vmul.f32 0.5, %v914_v54 }
 0x280   : > { %v1161_v58 = vmul.f32 0.70710677, %v916_v15  ;;  %v919_v30 = vpop.f32.mrb[6].mxu0  ;;  %v1097_v47 = vmul.f32 0.5, %v916_v15 }
 0x281   : > { %2096 = verf.f32 %v1160_v11  ;;  %v3095_v52 = vadd.f32 %v919_v30, %v3084_v48  ;;  %v921_v62 = vpop.f32.mrb[7].mxu0 }
 0x282   : > { %2098 = verf.f32 %v1161_v58  ;;  %v922_v3 = vadd.f32 %v921_v62, %v3086_v38 }
 0x283   : > { %v2089_v60 = vpop.eup %2088  ;;  %v1162_v18 = vmul.f32 0.70710677, %v3095_v52  ;;  %v1098_v37 = vmul.f32 0.5, %v3095_v52 }
 0x284   : > { %v2091_v61 = vpop.eup %2090  ;;  %v1284_v16 = vadd.f32 1.0, %v2089_v60  ;;  %v1163_v23 = vmul.f32 0.70710677, %v922_v3  ;;  %v925_v63 = vpop.f32.mrb[8].mxu0  ;;  %v1099_v35 = vmul.f32 0.5, %v922_v3 }
 0x285   : > { %v1285_v17 = vadd.f32 1.0, %v2091_v61  ;;  %2100 = verf.f32 %v1162_v18  ;;  %v3100_v46 = vadd.f32 %v925_v63, %v3084_v48  ;;  %v927_v8 = vpop.f32.mrb[9].mxu0 }
 0x286   : > { %2102 = verf.f32 %v1163_v23  ;;  %v928_v42 = vadd.f32 %v927_v8, %v3086_v38  ;;  %v1348_v7 = vmul.f32 %v1284_v16, %v1092_v34 }
 0x287   : > { %v2093_v10 = vpop.eup %2092  ;;  %v1164_v0 = vmul.f32 0.70710677, %v3100_v46  ;;  %v1349_v31 = vmul.f32 %v1285_v17, %v1093_v1  ;;  %v1100_v60 = vmul.f32 0.5, %v3100_v46 }
 0x288   : > { %v2095_v36 = vpop.eup %2094  ;;  %v1286_v19 = vadd.f32 1.0, %v2093_v10  ;;  %v1165_v39 = vmul.f32 0.70710677, %v928_v42  ;;  %v931_v40 = vpop.f32.mrb[10].mxu0  ;;  %v1101_v3 = vmul.f32 0.5, %v928_v42 }
 0x289   : > { %v1287_v33 = vadd.f32 1.0, %v2095_v36  ;;  %2104 = verf.f32 %v1164_v0  ;;  %v3105_v56 = vadd.f32 %v931_v40, %v3084_v48  ;;  %v933_v20 = vpop.f32.mrb[11].mxu0  ;;  %1515 = vmatprep.mubr.f32.mxu0 %v1349_v31 }
 0x28a   : > { %2106 = verf.f32 %v1165_v39  ;;  %v934_v59 = vadd.f32 %v933_v20, %v3086_v38  ;;  %1516 = vmatmul.mubr.f32.vlgmr.msra.gmra.mrb[64].mxu0 %v1348_v7  ;;  %v1350_v50 = vmul.f32 %v1286_v19, %v1094_v2 }
 0x28b   : > { %v2097_v49 = vpop.eup %2096  ;;  %v1166_v43 = vmul.f32 0.70710677, %v3105_v56  ;;  %v1351_v22 = vmul.f32 %v1287_v33, %v1095_v6  ;;  %v1102_v31 = vmul.f32 0.5, %v3105_v56 }
 0x28c   : > { %v2099_v44 = vpop.eup %2098  ;;  %v1288_v45 = vadd.f32 1.0, %v2097_v49  ;;  %v1167_v21 = vmul.f32 0.70710677, %v934_v59  ;;  %v937_v24 = vpop.f32.mrb[12].mxu0  ;;  %v1103_v42 = vmul.f32 0.5, %v934_v59 }
 0x28d   : > { %v1289_v51 = vadd.f32 1.0, %v2099_v44  ;;  %2108 = verf.f32 %v1166_v43  ;;  %1520 = vmatprep.mubr.f32.mxu0 %v1351_v22  ;;  %v3110_v4 = vadd.f32 %v937_v24, %v3084_v48  ;;  %v939_v57 = vpop.f32.mrb[13].mxu0 }
 0x28e   : > { %2110 = verf.f32 %v1167_v21  ;;  %1521 = vmatmul.mubr.f32.gmra.mrb[66].mxu0 %v1350_v50  ;;  %v940_v41 = vadd.f32 %v939_v57, %v3086_v38  ;;  %v1352_v26 = vmul.f32 %v1288_v45, %v1096_v9 }
 0x28f   : > { %v2101_v27 = vpop.eup %2100  ;;  %v1353_v25 = vmul.f32 %v1289_v51, %v1097_v47  ;;  %v1168_v5 = vmul.f32 0.70710677, %v3110_v4  ;;  %v1104_v45 = vmul.f32 0.5, %v3110_v4 }
 0x290   : > { %v2103_v14 = vpop.eup %2102  ;;  %v1290_v12 = vadd.f32 1.0, %v2101_v27  ;;  %v1169_v53 = vmul.f32 0.70710677, %v940_v41  ;;  %v943_v13 = vpop.f32.mrb[14].mxu0  ;;  %v1105_v56 = vmul.f32 0.5, %v940_v41 }
 0x291   : > { %v1291_v32 = vadd.f32 1.0, %v2103_v14  ;;  %1525 = vmatprep.mubr.f32.mxu0 %v1353_v25  ;;  %2112 = verf.f32 %v1168_v5  ;;  %v3116_v28 = vadd.f32 %v943_v13, %v3084_v48  ;;  %v945_v54 = vpop.f32.mrb[15].mxu0 }
 0x292   : > { %1526 = vmatmul.mubr.f32.gmra.mrb[68].mxu0 %v1352_v26  ;;  %2114 = verf.f32 %v1169_v53  ;;  %v946_v58 = vadd.f32 %v945_v54, %v3086_v38  ;;  %v1354_v30 = vmul.f32 %v1290_v12, %v1098_v37 }
 0x293   : > { %v2105_v55 = vpop.eup %2104  ;;  %v1355_v29 = vmul.f32 %v1291_v32, %v1099_v35  ;;  %v1170_v62 = vmul.f32 0.70710677, %v3116_v28  ;;  %v1106_v35 = vmul.f32 0.5, %v3116_v28 }
 0x294   : > { %v2107_v15 = vpop.eup %2106  ;;  %v1292_v11 = vadd.f32 1.0, %v2105_v55  ;;  %v1171_v18 = vmul.f32 0.70710677, %v946_v58  ;;  %v949_v61 = vpop.f32.mrb[16].mxu0  ;;  %v1107_v4 = vmul.f32 0.5, %v946_v58 }
 0x295   : > { %1530 = vmatprep.mubr.f32.mxu0 %v1355_v29  ;;  %v1293_v52 = vadd.f32 1.0, %v2107_v15  ;;  %2116 = verf.f32 %v1170_v62  ;;  %v3122_v23 = vadd.f32 %v949_v61, %v3084_v48  ;;  %v951_v63 = vpop.f32.mrb[17].mxu0 }
 0x296   : > { %1531 = vmatmul.mubr.f32.gmra.mrb[70].mxu0 %v1354_v30  ;;  %2118 = verf.f32 %v1171_v18  ;;  %v952_v34 = vadd.f32 %v951_v63, %v3086_v38  ;;  %v1356_v10 = vmul.f32 %v1292_v11, %v1100_v60 }
 0x297   : > { %v2109_v16 = vpop.eup %2108  ;;  %v1357_v1 = vmul.f32 %v1293_v52, %v1101_v3  ;;  %v1172_v46 = vmul.f32 0.70710677, %v3122_v23  ;;  %v1108_v3 = vmul.f32 0.5, %v3122_v23 }
 0x298   : > { %v2111_v17 = vpop.eup %2110  ;;  %v1294_v8 = vadd.f32 1.0, %v2109_v16  ;;  %v1173_v36 = vmul.f32 0.70710677, %v952_v34  ;;  %v955_v7 = vpop.f32.mrb[18].mxu0  ;;  %v1109_v58 = vmul.f32 0.5, %v952_v34 }
 0x299   : > { %v1295_v0 = vadd.f32 1.0, %v2111_v17  ;;  %1535 = vmatprep.mubr.f32.mxu1 %v1357_v1  ;;  %2120 = verf.f32 %v1172_v46  ;;  %v3128_v19 = vadd.f32 %v955_v7, %v3084_v48  ;;  %v957_v39 = vpop.f32.mrb[19].mxu0 }
 0x29a   : > { %1536 = vmatmul.mubr.f32.vlgmr.msra.gmra.mrb[0].mxu1 %v1356_v10  ;;  %2122 = verf.f32 %v1173_v36  ;;  %v958_v33 = vadd.f32 %v957_v39, %v3086_v38  ;;  %v1358_v20 = vmul.f32 %v1294_v8, %v1102_v31 }
 0x29b   : > { %v1359_v40 = vmul.f32 %v1295_v0, %v1103_v42  ;;  %v2113_v6 = vpop.eup %2112  ;;  %v1174_v49 = vmul.f32 0.70710677, %v3128_v19  ;;  %v1110_v0 = vmul.f32 0.5, %v3128_v19 }
 0x29c   : > { %v2115_v2 = vpop.eup %2114  ;;  %v1296_v59 = vadd.f32 1.0, %v2113_v6  ;;  %v1175_v22 = vmul.f32 0.70710677, %v958_v33  ;;  %v961_v44 = vpop.f32.mrb[20].mxu0  ;;  %v1111_v34 = vmul.f32 0.5, %v958_v33 }
 0x29d   : > { %1540 = vmatprep.mubr.f32.mxu1 %v1359_v40  ;;  %v1297_v43 = vadd.f32 1.0, %v2115_v2  ;;  %2124 = verf.f32 %v1174_v49  ;;  %v3134_v21 = vadd.f32 %v961_v44, %v3084_v48  ;;  %v963_v50 = vpop.f32.mrb[21].mxu0 }
 0x29e   : > { %1541 = vmatmul.mubr.f32.gmra.mrb[2].mxu1 %v1358_v20  ;;  %2126 = verf.f32 %v1175_v22  ;;  %v3137_v47 = vadd.f32 %v963_v50, %v3086_v38  ;;  %v1360_v57 = vmul.f32 %v1296_v59, %v1104_v45 }
 0x29f   : > { %v1361_v51 = vmul.f32 %v1297_v43, %v1105_v56  ;;  %v2117_v24 = vpop.eup %2116  ;;  %v1176_v9 = vmul.f32 0.70710677, %v3134_v21  ;;  %v1112_v56 = vmul.f32 0.5, %v3134_v21 }
 0x2a0   : > { %v2119_v27 = vpop.eup %2118  ;;  %v1298_v41 = vadd.f32 1.0, %v2117_v24  ;;  %v1177_v25 = vmul.f32 0.70710677, %v3137_v47  ;;  %v967_v14 = vpop.f32.mrb[22].mxu0  ;;  %v1113_v2 = vmul.f32 0.5, %v3137_v47 }
 0x2a1   : > { %1545 = vmatprep.mubr.f32.mxu1 %v1361_v51  ;;  %v1299_v12 = vadd.f32 1.0, %v2119_v27  ;;  %2128 = verf.f32 %v1176_v9  ;;  %v3142_v5 = vadd.f32 %v967_v14, %v3084_v48  ;;  %v969_v26 = vpop.f32.mrb[23].mxu0 }
 0x2a2   : > { %1546 = vmatmul.mubr.f32.gmra.mrb[4].mxu1 %v1360_v57  ;;  %2130 = verf.f32 %v1177_v25  ;;  %v3146_v32 = vadd.f32 %v969_v26, %v3086_v38  ;;  %v1362_v11 = vmul.f32 %v1298_v41, %v1106_v35 }
 0x2a3   : > { %v2121_v53 = vpop.eup %2120  ;;  %v1178_v37 = vmul.f32 0.70710677, %v3142_v5  ;;  %v1363_v13 = vmul.f32 %v1299_v12, %v1107_v4  ;;  %v1114_v25 = vmul.f32 0.5, %v3142_v5 }
 0x2a4   : > { %v2123_v55 = vpop.eup %2122  ;;  %v1300_v54 = vadd.f32 1.0, %v2121_v53  ;;  %v1179_v29 = vmul.f32 0.70710677, %v3146_v32  ;;  %v973_v15 = vpop.f32.mrb[24].mxu0  ;;  %v1115_v57 = vmul.f32 0.5, %v3146_v32 }
 0x2a5   : > { %v1301_v30 = vadd.f32 1.0, %v2123_v55  ;;  %2132 = verf.f32 %v1178_v37  ;;  %v3151_v62 = vadd.f32 %v973_v15, %v3084_v48  ;;  %v975_v28 = vpop.f32.mrb[25].mxu0  ;;  %1550 = vmatprep.mubr.f32.mxu1 %v1363_v13 }
 0x2a6   : > { %2134 = verf.f32 %v1179_v29  ;;  %v3155_v52 = vadd.f32 %v975_v28, %v3086_v38  ;;  %1551 = vmatmul.mubr.f32.gmra.mrb[6].mxu1 %v1362_v11  ;;  %v1364_v8 = vmul.f32 %v1300_v54, %v1108_v3 }
 0x2a7   : > { %v2125_v60 = vpop.eup %2124  ;;  %v1180_v18 = vmul.f32 0.70710677, %v3151_v62  ;;  %v1365_v61 = vmul.f32 %v1301_v30, %v1109_v58  ;;  %v1116_v15 = vmul.f32 0.5, %v3151_v62 }
 0x2a8   : > { %v2127_v16 = vpop.eup %2126  ;;  %v1302_v63 = vadd.f32 1.0, %v2125_v60  ;;  %v1181_v1 = vmul.f32 0.70710677, %v3155_v52  ;;  %v979_v17 = vpop.f32.mrb[26].mxu0  ;;  %v1117_v55 = vmul.f32 0.5, %v3155_v52 }
 0x2a9   : > { %v1303_v10 = vadd.f32 1.0, %v2127_v16  ;;  %2136 = verf.f32 %v1180_v18  ;;  %v3160_v23 = vadd.f32 %v979_v17, %v3084_v48  ;;  %v981_v42 = vpop.f32.mrb[27].mxu0  ;;  %1555 = vmatprep.mubr.f32.mxu1 %v1365_v61 }
 0x2aa   : > { %2138 = verf.f32 %v1181_v1  ;;  %v3164_v46 = vadd.f32 %v981_v42, %v3086_v38  ;;  %1556 = vmatmul.mubr.f32.gmra.mrb[8].mxu1 %v1364_v8  ;;  %v1366_v20 = vmul.f32 %v1302_v63, %v1110_v0 }
 0x2ab   : > { %v2129_v31 = vpop.eup %2128  ;;  %v1182_v36 = vmul.f32 0.70710677, %v3160_v23  ;;  %v1367_v7 = vmul.f32 %v1303_v10, %v1111_v34  ;;  %v1118_v17 = vmul.f32 0.5, %v3160_v23 }
 0x2ac   : > { %v2131_v39 = vpop.eup %2130  ;;  %v1304_v40 = vadd.f32 1.0, %v2129_v31  ;;  %v1183_v6 = vmul.f32 0.70710677, %v3164_v46  ;;  %v985_v33 = vpop.f32.mrb[28].mxu0  ;;  %v1119_v16 = vmul.f32 0.5, %v3164_v46 }
 0x2ad   : > { %v1305_v59 = vadd.f32 1.0, %v2131_v39  ;;  %2140 = verf.f32 %v1182_v36  ;;  %v3170_v19 = vadd.f32 %v985_v33, %v3084_v48  ;;  %v987_v49 = vpop.f32.mrb[29].mxu0  ;;  %1560 = vmatprep.mubr.f32.mxu1 %v1367_v7 }
 0x2ae   : > { %2142 = verf.f32 %v1183_v6  ;;  %v3174_v43 = vadd.f32 %v987_v49, %v3086_v38  ;;  %1561 = vmatmul.mubr.f32.gmra.mrb[10].mxu1 %v1366_v20  ;;  %v1368_v9 = vmul.f32 %v1304_v40, %v1112_v56 }
 0x2af   : > { %v2133_v22 = vpop.eup %2132  ;;  %v1184_v44 = vmul.f32 0.70710677, %v3170_v19  ;;  %v1369_v45 = vmul.f32 %v1305_v59, %v1113_v2  ;;  %v1120_v33 = vmul.f32 0.5, %v3170_v19 }
 0x2b0   : > { %v2135_v50 = vpop.eup %2134  ;;  %v1306_v47 = vadd.f32 1.0, %v2133_v22  ;;  %v1185_v51 = vmul.f32 0.70710677, %v3174_v43  ;;  %v991_v24 = vpop.f32.mrb[30].mxu0  ;;  %v1121_v39 = vmul.f32 0.5, %v3174_v43 }
 0x2b1   : > { %v1307_v27 = vadd.f32 1.0, %v2135_v50  ;;  %2144 = verf.f32 %v1184_v44  ;;  %v3180_v21 = vadd.f32 %v991_v24, %v3084_v48  ;;  %v993_v41 = vpop.f32.mrb[31].mxu0  ;;  %1565 = vmatprep.mubr.f32.mxu1 %v1369_v45 }
 0x2b2   : > { %2146 = verf.f32 %v1185_v51  ;;  %v3184_v14 = vadd.f32 %v993_v41, %v3086_v38  ;;  %1566 = vmatmul.mubr.f32.gmra.mrb[12].mxu1 %v1368_v9  ;;  %v1370_v13 = vmul.f32 %v1306_v47, %v1114_v25 }
 0x2b3   : > { %v2137_v4 = vpop.eup %2136  ;;  %v1186_v12 = vmul.f32 0.70710677, %v3180_v21  ;;  %v1371_v26 = vmul.f32 %v1307_v27, %v1115_v57  ;;  %v1122_v24 = vmul.f32 0.5, %v3180_v21 }
 0x2b4   : > { %v2139_v35 = vpop.eup %2138  ;;  %v1308_v32 = vadd.f32 1.0, %v2137_v4  ;;  %v1187_v53 = vmul.f32 0.70710677, %v3184_v14  ;;  %v997_v37 = vpop.f32.mrb[32].mxu0  ;;  %v1123_v50 = vmul.f32 0.5, %v3184_v14 }
 0x2b5   : > { %v1309_v54 = vadd.f32 1.0, %v2139_v35  ;;  %2148 = verf.f32 %v1186_v12  ;;  %v3190_v5 = vadd.f32 %v997_v37, %v3084_v48  ;;  %v999_v29 = vpop.f32.mrb[33].mxu0  ;;  %1570 = vmatprep.mubr.f32.mxu1 %v1371_v26 }
 0x2b6   : > { %2150 = verf.f32 %v1187_v53  ;;  %v3194_v11 = vadd.f32 %v999_v29, %v3086_v38  ;;  %1571 = vmatmul.mubr.f32.gmra.mrb[14].mxu1 %v1370_v13  ;;  %v1372_v61 = vmul.f32 %v1308_v32, %v1116_v15 }
 0x2b7   : > { %v2141_v58 = vpop.eup %2140  ;;  %v1188_v30 = vmul.f32 0.70710677, %v3190_v5  ;;  %v1373_v28 = vmul.f32 %v1309_v54, %v1117_v55  ;;  %v1124_v37 = vmul.f32 0.5, %v3190_v5 }
 0x2b8   : > { %v2143_v3 = vpop.eup %2142  ;;  %v1310_v52 = vadd.f32 1.0, %v2141_v58  ;;  %v1189_v60 = vmul.f32 0.70710677, %v3194_v11  ;;  %v1003_v18 = vpop.f32.mrb[34].mxu0  ;;  %v1125_v35 = vmul.f32 0.5, %v3194_v11 }
 0x2b9   : > { %v1311_v63 = vadd.f32 1.0, %v2143_v3  ;;  %2152 = verf.f32 %v1188_v30  ;;  %v3200_v62 = vadd.f32 %v1003_v18, %v3084_v48  ;;  %v1005_v1 = vpop.f32.mrb[35].mxu0  ;;  %1575 = vmatprep.mubr.f32.mxu1 %v1373_v28 }
 0x2ba   : > { %2154 = verf.f32 %v1189_v60  ;;  %v3204_v8 = vadd.f32 %v1005_v1, %v3086_v38  ;;  %1576 = vmatmul.mubr.f32.gmra.mrb[16].mxu1 %v1372_v61  ;;  %v1374_v7 = vmul.f32 %v1310_v52, %v1118_v17 }
 0x2bb   : > { %v2145_v34 = vpop.eup %2144  ;;  %v1190_v10 = vmul.f32 0.70710677, %v3200_v62  ;;  %v1375_v42 = vmul.f32 %v1311_v63, %v1119_v16  ;;  %v1126_v18 = vmul.f32 0.5, %v3200_v62 }
 0x2bc   : > { %v2147_v0 = vpop.eup %2146  ;;  %v1312_v46 = vadd.f32 1.0, %v2145_v34  ;;  %v1191_v31 = vmul.f32 0.70710677, %v3204_v8  ;;  %v1009_v36 = vpop.f32.mrb[36].mxu0  ;;  %v1127_v3 = vmul.f32 0.5, %v3204_v8 }
 0x2bd   : > { %v1313_v40 = vadd.f32 1.0, %v2147_v0  ;;  %2156 = verf.f32 %v1190_v10  ;;  %v3210_v23 = vadd.f32 %v1009_v36, %v3084_v48  ;;  %v1011_v6 = vpop.f32.mrb[37].mxu0  ;;  %1580 = vmatprep.mubr.f32.mxu1 %v1375_v42 }
 0x2be   : > { %2158 = verf.f32 %v1191_v31  ;;  %v3214_v20 = vadd.f32 %v1011_v6, %v3086_v38  ;;  %1581 = vmatmul.mubr.f32.gmra.mrb[18].mxu1 %v1374_v7  ;;  %v1376_v45 = vmul.f32 %v1312_v46, %v1120_v33 }
 0x2bf   : > { %v2149_v2 = vpop.eup %2148  ;;  %v1192_v59 = vmul.f32 0.70710677, %v3210_v23  ;;  %v1377_v49 = vmul.f32 %v1313_v40, %v1121_v39  ;;  %v1128_v36 = vmul.f32 0.5, %v3210_v23 }
 0x2c0   : > { %v2151_v56 = vpop.eup %2150  ;;  %v1314_v43 = vadd.f32 1.0, %v2149_v2  ;;  %v1193_v22 = vmul.f32 0.70710677, %v3214_v20  ;;  %v1015_v44 = vpop.f32.mrb[38].mxu0  ;;  %v1129_v0 = vmul.f32 0.5, %v3214_v20 }
 0x2c1   : > { %v1315_v47 = vadd.f32 1.0, %v2151_v56  ;;  %2160 = verf.f32 %v1192_v59  ;;  %v3220_v19 = vadd.f32 %v1015_v44, %v3084_v48  ;;  %v1017_v51 = vpop.f32.mrb[39].mxu0  ;;  %1585 = vmatprep.mubr.f32.mxu1 %v1377_v49 }
 0x2c2   : > { %2162 = verf.f32 %v1193_v22  ;;  %v3224_v9 = vadd.f32 %v1017_v51, %v3086_v38  ;;  %1586 = vmatmul.mubr.f32.gmra.mrb[20].mxu1 %v1376_v45  ;;  %v1378_v26 = vmul.f32 %v1314_v43, %v1122_v24 }
 0x2c3   : > { %v2153_v57 = vpop.eup %2152  ;;  %v1194_v27 = vmul.f32 0.70710677, %v3220_v19  ;;  %v1379_v41 = vmul.f32 %v1315_v47, %v1123_v50  ;;  %v1130_v44 = vmul.f32 0.5, %v3220_v19 }
 0x2c4   : > { %v2155_v25 = vpop.eup %2154  ;;  %v1316_v14 = vadd.f32 1.0, %v2153_v57  ;;  %v1195_v4 = vmul.f32 0.70710677, %v3224_v9  ;;  %v1021_v12 = vpop.f32.mrb[40].mxu0  ;;  %v1131_v56 = vmul.f32 0.5, %v3224_v9 }
 0x2c5   : > { %v1317_v32 = vadd.f32 1.0, %v2155_v25  ;;  %2164 = verf.f32 %v1194_v27  ;;  %v3230_v21 = vadd.f32 %v1021_v12, %v3084_v48  ;;  %v1023_v53 = vpop.f32.mrb[41].mxu0  ;;  %1590 = vmatprep.mubr.f32.mxu1 %v1379_v41 }
 0x2c6   : > { %2166 = verf.f32 %v1195_v4  ;;  %v3234_v13 = vadd.f32 %v1023_v53, %v3086_v38  ;;  %1591 = vmatmul.mubr.f32.gmra.mrb[22].mxu1 %v1378_v26  ;;  %v1380_v28 = vmul.f32 %v1316_v14, %v1124_v37 }
 0x2c7   : > { %v2157_v55 = vpop.eup %2156  ;;  %v1196_v54 = vmul.f32 0.70710677, %v3230_v21  ;;  %v1381_v29 = vmul.f32 %v1317_v32, %v1125_v35  ;;  %v1132_v12 = vmul.f32 0.5, %v3230_v21 }
 0x2c8   : > { %v2159_v15 = vpop.eup %2158  ;;  %v1318_v11 = vadd.f32 1.0, %v2157_v55  ;;  %v1197_v58 = vmul.f32 0.70710677, %v3234_v13  ;;  %v1027_v30 = vpop.f32.mrb[42].mxu0  ;;  %v1133_v25 = vmul.f32 0.5, %v3234_v13 }
 0x2c9   : > { %v1319_v52 = vadd.f32 1.0, %v2159_v15  ;;  %2168 = verf.f32 %v1196_v54  ;;  %v3240_v5 = vadd.f32 %v1027_v30, %v3084_v48  ;;  %v1029_v60 = vpop.f32.mrb[43].mxu0  ;;  %1595 = vmatprep.mubr.f32.mxu1 %v1381_v29 }
 0x2ca   : > { %2170 = verf.f32 %v1197_v58  ;;  %v3244_v61 = vadd.f32 %v1029_v60, %v3086_v38  ;;  %1596 = vmatmul.mubr.f32.gmra.mrb[24].mxu1 %v1380_v28  ;;  %v1382_v42 = vmul.f32 %v1318_v11, %v1126_v18 }
 0x2cb   : > { %v2161_v16 = vpop.eup %2160  ;;  %v1198_v63 = vmul.f32 0.70710677, %v3240_v5  ;;  %v1383_v1 = vmul.f32 %v1319_v52, %v1127_v3  ;;  %v1134_v30 = vmul.f32 0.5, %v3240_v5 }
 0x2cc   : > { %v2163_v17 = vpop.eup %2162  ;;  %v1320_v8 = vadd.f32 1.0, %v2161_v16  ;;  %v1199_v34 = vmul.f32 0.70710677, %v3244_v61  ;;  %v1033_v10 = vpop.f32.mrb[44].mxu0  ;;  %v1135_v15 = vmul.f32 0.5, %v3244_v61 }
 0x2cd   : > { %v1321_v46 = vadd.f32 1.0, %v2163_v17  ;;  %2172 = verf.f32 %v1198_v63  ;;  %v3250_v62 = vadd.f32 %v1033_v10, %v3084_v48  ;;  %v1035_v31 = vpop.f32.mrb[45].mxu0  ;;  %1600 = vmatprep.mubr.f32.mxu1 %v1383_v1 }
 0x2ce   : > { %2174 = verf.f32 %v1199_v34  ;;  %v3254_v7 = vadd.f32 %v1035_v31, %v3086_v38  ;;  %1601 = vmatmul.mubr.f32.gmra.mrb[26].mxu1 %v1382_v42  ;;  %v1384_v49 = vmul.f32 %v1320_v8, %v1128_v36 }
 0x2cf   : > { %v2165_v39 = vpop.eup %2164  ;;  %v1200_v40 = vmul.f32 0.70710677, %v3250_v62  ;;  %v1385_v6 = vmul.f32 %v1321_v46, %v1129_v0  ;;  %v1136_v10 = vmul.f32 0.5, %v3250_v62 }
 0x2d0   : > { %v2167_v33 = vpop.eup %2166  ;;  %v1322_v20 = vadd.f32 1.0, %v2165_v39  ;;  %v1201_v2 = vmul.f32 0.70710677, %v3254_v7  ;;  %v1039_v59 = vpop.f32.mrb[46].mxu0  ;;  %v1137_v17 = vmul.f32 0.5, %v3254_v7 }
 0x2d1   : > { %v1323_v43 = vadd.f32 1.0, %v2167_v33  ;;  %2176 = verf.f32 %v1200_v40  ;;  %v3260_v23 = vadd.f32 %v1039_v59, %v3084_v48  ;;  %v1041_v22 = vpop.f32.mrb[47].mxu0  ;;  %1605 = vmatprep.mubr.f32.mxu1 %v1385_v6 }
 0x2d2   : > { %2178 = verf.f32 %v1201_v2  ;;  %v3264_v45 = vadd.f32 %v1041_v22, %v3086_v38  ;;  %1606 = vmatmul.mubr.f32.gmra.mrb[28].mxu1 %v1384_v49  ;;  %v1386_v41 = vmul.f32 %v1322_v20, %v1130_v44 }
 0x2d3   : > { %v2169_v50 = vpop.eup %2168  ;;  %v1202_v47 = vmul.f32 0.70710677, %v3260_v23  ;;  %v1387_v51 = vmul.f32 %v1323_v43, %v1131_v56  ;;  %v1138_v59 = vmul.f32 0.5, %v3260_v23 }
 0x2d4   : > { %v2171_v24 = vpop.eup %2170  ;;  %v1324_v9 = vadd.f32 1.0, %v2169_v50  ;;  %v1203_v57 = vmul.f32 0.70710677, %v3264_v45  ;;  %v1045_v27 = vpop.f32.mrb[48].mxu0  ;;  %v1139_v33 = vmul.f32 0.5, %v3264_v45 }
 0x2d5   : > { %v1325_v14 = vadd.f32 1.0, %v2171_v24  ;;  %2180 = verf.f32 %v1202_v47  ;;  %v3270_v19 = vadd.f32 %v1045_v27, %v3084_v48  ;;  %v1047_v4 = vpop.f32.mrb[49].mxu0  ;;  %1610 = vmatprep.mubr.f32.mxu1 %v1387_v51 }
 0x2d6   : > { %2182 = verf.f32 %v1203_v57  ;;  %v3274_v26 = vadd.f32 %v1047_v4, %v3086_v38  ;;  %1611 = vmatmul.mubr.f32.gmra.mrb[30].mxu1 %v1386_v41  ;;  %v1388_v29 = vmul.f32 %v1324_v9, %v1132_v12 }
 0x2d7   : > { %v2173_v35 = vpop.eup %2172  ;;  %v1204_v32 = vmul.f32 0.70710677, %v3270_v19  ;;  %v1389_v53 = vmul.f32 %v1325_v14, %v1133_v25  ;;  %v1140_v27 = vmul.f32 0.5, %v3270_v19 }
 0x2d8   : > { %v2175_v37 = vpop.eup %2174  ;;  %v1326_v13 = vadd.f32 1.0, %v2173_v35  ;;  %v1205_v55 = vmul.f32 0.70710677, %v3274_v26  ;;  %v1051_v54 = vpop.f32.mrb[50].mxu0  ;;  %v1141_v24 = vmul.f32 0.5, %v3274_v26 }
 0x2d9   : > { %v1327_v11 = vadd.f32 1.0, %v2175_v37  ;;  %2184 = verf.f32 %v1204_v32  ;;  %v3280_v21 = vadd.f32 %v1051_v54, %v3084_v48  ;;  %v1053_v58 = vpop.f32.mrb[51].mxu0  ;;  %1615 = vmatprep.mubr.f32.mxu1 %v1389_v53 }
 0x2da   : > { %2186 = verf.f32 %v1205_v55  ;;  %v3284_v28 = vadd.f32 %v1053_v58, %v3086_v38  ;;  %1616 = vmatmul.mubr.f32.gmra.mrb[32].mxu1 %v1388_v29  ;;  %v1390_v1 = vmul.f32 %v1326_v13, %v1134_v30 }
 0x2db   : > { %v2177_v3 = vpop.eup %2176  ;;  %v1206_v52 = vmul.f32 0.70710677, %v3280_v21  ;;  %v1391_v60 = vmul.f32 %v1327_v11, %v1135_v15  ;;  %v1142_v54 = vmul.f32 0.5, %v3280_v21 }
 0x2dc   : > { %v2179_v18 = vpop.eup %2178  ;;  %v1328_v61 = vadd.f32 1.0, %v2177_v3  ;;  %v1207_v16 = vmul.f32 0.70710677, %v3284_v28  ;;  %v1057_v63 = vpop.f32.mrb[52].mxu0  ;;  %v1143_v37 = vmul.f32 0.5, %v3284_v28 }
 0x2dd   : > { %v1329_v8 = vadd.f32 1.0, %v2179_v18  ;;  %2188 = verf.f32 %v1206_v52  ;;  %v3290_v5 = vadd.f32 %v1057_v63, %v3084_v48  ;;  %v1059_v34 = vpop.f32.mrb[53].mxu0  ;;  %1620 = vmatprep.mubr.f32.mxu1 %v1391_v60 }
 0x2de   : > { %2190 = verf.f32 %v1207_v16  ;;  %v3294_v42 = vadd.f32 %v1059_v34, %v3086_v38  ;;  %1621 = vmatmul.mubr.f32.gmra.mrb[34].mxu1 %v1390_v1  ;;  %v1392_v6 = vmul.f32 %v1328_v61, %v1136_v10 }
 0x2df   : > { %v2181_v0 = vpop.eup %2180  ;;  %v1208_v46 = vmul.f32 0.70710677, %v3290_v5  ;;  %v1393_v31 = vmul.f32 %v1329_v8, %v1137_v17  ;;  %v1144_v63 = vmul.f32 0.5, %v3290_v5 }
 0x2e0   : > { %v2183_v36 = vpop.eup %2182  ;;  %v1330_v7 = vadd.f32 1.0, %v2181_v0  ;;  %v1209_v39 = vmul.f32 0.70710677, %v3294_v42  ;;  %v1063_v40 = vpop.f32.mrb[54].mxu0  ;;  %v1145_v18 = vmul.f32 0.5, %v3294_v42 }
 0x2e1   : > { %v1331_v20 = vadd.f32 1.0, %v2183_v36  ;;  %2192 = verf.f32 %v1208_v46  ;;  %v3300_v62 = vadd.f32 %v1063_v40, %v3084_v48  ;;  %v1065_v2 = vpop.f32.mrb[55].mxu0  ;;  %1625 = vmatprep.mubr.f32.mxu1 %v1393_v31 }
 0x2e2   : > { %2194 = verf.f32 %v1209_v39  ;;  %v3304_v49 = vadd.f32 %v1065_v2, %v3086_v38  ;;  %1626 = vmatmul.mubr.f32.gmra.mrb[36].mxu1 %v1392_v6  ;;  %v1394_v51 = vmul.f32 %v1330_v7, %v1138_v59 }
 0x2e3   : > { %v2185_v56 = vpop.eup %2184  ;;  %v1210_v43 = vmul.f32 0.70710677, %v3300_v62  ;;  %v1395_v22 = vmul.f32 %v1331_v20, %v1139_v33  ;;  %v1146_v5 = vmul.f32 0.5, %v3300_v62 }
 0x2e4   : > { %v2187_v44 = vpop.eup %2186  ;;  %v1332_v45 = vadd.f32 1.0, %v2185_v56  ;;  %v1211_v50 = vmul.f32 0.70710677, %v3304_v49  ;;  %v1069_v47 = vpop.f32.mrb[56].mxu0  ;;  %v1147_v36 = vmul.f32 0.5, %v3304_v49 }
 0x2e5   : > { %v1333_v9 = vadd.f32 1.0, %v2187_v44  ;;  %2196 = verf.f32 %v1210_v43  ;;  %v3310_v23 = vadd.f32 %v1069_v47, %v3084_v48  ;;  %v1071_v57 = vpop.f32.mrb[57].mxu0  ;;  %1630 = vmatprep.mubr.f32.mxu1 %v1395_v22 }
 0x2e6   : > { %2198 = verf.f32 %v1211_v50  ;;  %v3314_v41 = vadd.f32 %v1071_v57, %v3086_v38  ;;  %1631 = vmatmul.mubr.f32.gmra.mrb[38].mxu1 %v1394_v51  ;;  %v1396_v53 = vmul.f32 %v1332_v45, %v1140_v27 }
 0x2e7   : > { %v2189_v25 = vpop.eup %2188  ;;  %v1212_v14 = vmul.f32 0.70710677, %v3310_v23  ;;  %v1397_v4 = vmul.f32 %v1333_v9, %v1141_v24 }
 0x2e8   : > { %v2191_v12 = vpop.eup %2190  ;;  %v1334_v26 = vadd.f32 1.0, %v2189_v25  ;;  %v1213_v35 = vmul.f32 0.70710677, %v3314_v41  ;;  %v1075_v32 = vpop.f32.mrb[58].mxu0  ;;  %v1149_v49 = vmul.f32 0.5, %v3314_v41 }
 0x2e9   : > { %v1335_v13 = vadd.f32 1.0, %v2191_v12  ;;  %2200 = verf.f32 %v1212_v14  ;;  %v3320_v19 = vadd.f32 %v1075_v32, %v3084_v48  ;;  %v1077_v55 = vpop.f32.mrb[59].mxu0  ;;  %1635 = vmatprep.mubr.f32.mxu1 %v1397_v4 }
 0x2ea   : > { %2202 = verf.f32 %v1213_v35  ;;  %v1078_v29 = vadd.f32 %v1077_v55, %v3086_v38  ;;  %1636 = vmatmul.mubr.f32.gmra.mrb[40].mxu1 %v1396_v53  ;;  %v1398_v60 = vmul.f32 %v1334_v26, %v1142_v54 }
 0x2eb   : > { %v2193_v15 = vpop.eup %2192  ;;  %v1214_v11 = vmul.f32 0.70710677, %v3320_v19  ;;  %v1399_v58 = vmul.f32 %v1335_v13, %v1143_v37  ;;  %v1150_v9 = vmul.f32 0.5, %v3320_v19 }
 0x2ec   : > { %v2195_v30 = vpop.eup %2194  ;;  %v1336_v3 = vadd.f32 1.0, %v2193_v15  ;;  %v1215_v28 = vmul.f32 0.70710677, %v1078_v29  ;;  %v1081_v52 = vpop.f32.mrb[60].mxu0  ;;  %v1151_v51 = vmul.f32 0.5, %v1078_v29 }
 0x2ed   : > { %v1337_v61 = vadd.f32 1.0, %v2195_v30  ;;  %2204 = verf.f32 %v1214_v11  ;;  %v1082_v16 = vadd.f32 %v1081_v52, %v3084_v48  ;;  %v1083_v21 = vpop.f32.mrb[61].mxu0  ;;  %1640 = vmatprep.mubr.f32.mxu1 %v1399_v58  ;;  %v3339_v15 = vld [vmem:[%s3466_s6] ss:$0 sm:$0xff] }
 0x2ee   : > { %2206 = verf.f32 %v1215_v28  ;;  %v1084_v1 = vadd.f32 %v1083_v21, %v3086_v38  ;;  %1641 = vmatmul.mubr.f32.gmra.mrb[42].mxu1 %v1398_v60  ;;  %v1400_v42 = vmul.f32 %v1336_v3, %v1144_v63 }
 0x2ef   : > { %v2197_v17 = vpop.eup %2196  ;;  %v1216_v8 = vmul.f32 0.70710677, %v1082_v16  ;;  %v1401_v34 = vmul.f32 %v1337_v61, %v1145_v18  ;;  %v1152_v12 = vmul.f32 0.5, %v1082_v16 }
 0x2f0   : > { %v2199_v10 = vpop.eup %2198  ;;  %v1338_v0 = vadd.f32 1.0, %v2197_v17  ;;  %v1217_v46 = vmul.f32 0.70710677, %v1084_v1  ;;  %v1087_v31 = vpop.f32.mrb[62].mxu0  ;;  %v1153_v4 = vmul.f32 0.5, %v1084_v1 }
 0x2f1   : > { %v1339_v7 = vadd.f32 1.0, %v2199_v10  ;;  %2208 = verf.f32 %v1216_v8  ;;  %v1088_v39 = vadd.f32 %v1087_v31, %v3084_v48  ;;  %v1089_v40 = vpop.f32.mrb[63].mxu0  ;;  %1645 = vmatprep.mubr.f32.mxu1 %v1401_v34  ;;  %v1148_v48 = vmul.f32 0.5, %v3310_v23 }
 0x2f2   : > { %2210 = verf.f32 %v1217_v46  ;;  %v1090_v6 = vadd.f32 %v1089_v40, %v3086_v38  ;;  %1646 = vmatmul.mubr.f32.gmra.mrb[44].mxu1 %v1400_v42  ;;  %v1402_v22 = vmul.f32 %v1338_v0, %v1146_v5 }
 0x2f3   : > { %v2201_v33 = vpop.eup %2200  ;;  %v1218_v20 = vmul.f32 0.70710677, %v1088_v39  ;;  %v1403_v2 = vmul.f32 %v1339_v7, %v1147_v36  ;;  %v1154_v19 = vmul.f32 0.5, %v1088_v39 }
 0x2f4   : > { %v2203_v59 = vpop.eup %2202  ;;  %v1340_v56 = vadd.f32 1.0, %v2201_v33  ;;  %v1219_v43 = vmul.f32 0.70710677, %v1090_v6  ;;  %v1155_v13 = vmul.f32 0.5, %v1090_v6 }
 0x2f5   : > { %v1341_v44 = vadd.f32 1.0, %v2203_v59  ;;  %2212 = verf.f32 %v1218_v20  ;;  %1650 = vmatprep.mubr.f32.mxu1 %v1403_v2 }
 0x2f6   : > { %2214 = verf.f32 %v1219_v43  ;;  %1651 = vmatmul.mubr.f32.gmra.mrb[46].mxu1 %v1402_v22  ;;  %v1404_v47 = vmul.f32 %v1340_v56, %v1148_v48 }
 0x2f7   : > { %v2205_v62 = vpop.eup %2204  ;;  %v1405_v45 = vmul.f32 %v1341_v44, %v1149_v49 }
 0x2f8   : > { %v2207_v38 = vpop.eup %2206  ;;  %v1342_v50 = vadd.f32 1.0, %v2205_v62 }
 0x2f9   : > { %v1343_v24 = vadd.f32 1.0, %v2207_v38  ;;  %1655 = vmatprep.mubr.f32.mxu1 %v1405_v45 }
 0x2fa   : > { %1656 = vmatmul.mubr.f32.gmra.mrb[48].mxu1 %v1404_v47  ;;  %v1406_v14 = vmul.f32 %v1342_v50, %v1150_v9 }
 0x2fb   : > { %v2209_v57 = vpop.eup %2208  ;;  %v1407_v27 = vmul.f32 %v1343_v24, %v1151_v51 }
 0x2fc   : > { %v2211_v41 = vpop.eup %2210  ;;  %v1344_v25 = vadd.f32 1.0, %v2209_v57 }
 0x2fd   : > { %v1345_v23 = vadd.f32 1.0, %v2211_v41  ;;  %1660 = vmatprep.mubr.f32.mxu1 %v1407_v27 }
 0x2fe   : > { %1661 = vmatmul.mubr.f32.gmra.mrb[50].mxu1 %v1406_v14  ;;  %v1408_v37 = vmul.f32 %v1344_v25, %v1152_v12 }
 0x2ff   : > { %v2213_v26 = vpop.eup %2212  ;;  %v1409_v35 = vmul.f32 %v1345_v23, %v1153_v4 }
 0x300   : > { %v2215_v32 = vpop.eup %2214  ;;  %v1346_v53 = vadd.f32 1.0, %v2213_v26 }
 0x301   : > { %v1347_v55 = vadd.f32 1.0, %v2215_v32  ;;  %1665 = vmatprep.mubr.f32.mxu1 %v1409_v35 }
 0x302   : > { %1666 = vmatmul.mubr.f32.gmra.mrb[52].mxu1 %v1408_v37  ;;  %v1410_v29 = vmul.f32 %v1346_v53, %v1154_v19 }
 0x303   : > { %v1411_v54 = vmul.f32 %v1347_v55, %v1155_v13 }
 0x305   : > { %1670 = vmatprep.mubr.f32.mxu1 %v1411_v54 }
 0x306   : > { %1671 = vmatmul.mubr.f32.gmra.mrb[54].mxu1 %v1410_v29 }
 0x35d   : > { %v1517_v11 = vpop.f32.mrb[64].mxu0 }
 0x35e   : > { %v1518_v58 = vadd.f32 %v3339_v15, %v1517_v11  ;;  %v1519_v30 = vpop.f32.mrb[65].mxu0 }
 0x360   : > { %1676 = vst [vmem:[%s3344_s21] sm:$0xff] %v1518_v58 }
 0x361   : > { %v1522_v3 = vpop.f32.mrb[66].mxu0 }
 0x362   : > { %v1523_v28 = vadd.f32 %v3339_v15, %v1522_v3  ;;  %v1524_v52 = vpop.f32.mrb[67].mxu0 }
 0x364   : > { %1677 = vst [vmem:[%s3344_s21 + $0x8] sm:$0xff] %v1523_v28 }
 0x365   : > { %v1527_v60 = vpop.f32.mrb[68].mxu0 }
 0x366   : > { %v1528_v18 = vadd.f32 %v3339_v15, %v1527_v60  ;;  %v1529_v61 = vpop.f32.mrb[69].mxu0 }
 0x368   : > { %1678 = vst [vmem:[%s3344_s21 + $0x10] sm:$0xff] %v1528_v18 }
 0x369   : > { %v1532_v16 = vpop.f32.mrb[70].mxu0 }
 0x36a   : > { %v1533_v21 = vadd.f32 %v3339_v15, %v1532_v16  ;;  %v1534_v63 = vpop.f32.mrb[71].mxu0 }
 0x36c   : > { %1679 = vst [vmem:[%s3344_s21 + $0x18] sm:$0xff] %v1533_v21 }
 0x36d   : > { %v1537_v1 = vpop.f32.mrb[0].mxu1 }
 0x36e   : > { %v1538_v17 = vadd.f32 %v3339_v15, %v1537_v1  ;;  %v1539_v8 = vpop.f32.mrb[1].mxu1 }
 0x370   : > { %1680 = vst [vmem:[%s3344_s21 + $0x20] sm:$0xff] %v1538_v17 }
 0x371   : > { %v1542_v34 = vpop.f32.mrb[2].mxu1 }
 0x372   : > { %v1543_v10 = vadd.f32 %v3339_v15, %v1542_v34  ;;  %v1544_v0 = vpop.f32.mrb[3].mxu1 }
 0x374   : > { %1681 = vst [vmem:[%s3344_s21 + $0x28] sm:$0xff] %v1543_v10 }
 0x375   : > { %v1547_v46 = vpop.f32.mrb[4].mxu1 }
 0x376   : > { %v1548_v31 = vadd.f32 %v3339_v15, %v1547_v46  ;;  %v1549_v42 = vpop.f32.mrb[5].mxu1 }
 0x378   : > { %1682 = vst [vmem:[%s3344_s21 + $0x30] sm:$0xff] %v1548_v31 }
 0x379   : > { %v1552_v36 = vpop.f32.mrb[6].mxu1 }
 0x37a   : > { %v1553_v7 = vadd.f32 %v3339_v15, %v1552_v36  ;;  %v1554_v39 = vpop.f32.mrb[7].mxu1 }
 0x37c   : > { %1683 = vst [vmem:[%s3344_s21 + $0x38] sm:$0xff] %v1553_v7 }
 0x37d   : > { %v1557_v40 = vpop.f32.mrb[8].mxu1 }
 0x37e   : > { %v1558_v5 = vadd.f32 %v3339_v15, %v1557_v40  ;;  %v1559_v6 = vpop.f32.mrb[9].mxu1 }
 0x380   : > { %1684 = vst [vmem:[%s3344_s21 + $0x40] sm:$0xff] %v1558_v5 }
 0x381   : > { %v1562_v33 = vpop.f32.mrb[10].mxu1 }
 0x382   : > { %v1563_v20 = vadd.f32 %v3339_v15, %v1562_v33  ;;  %v1564_v2 = vpop.f32.mrb[11].mxu1 }
 0x384   : > { %1685 = vst [vmem:[%s3344_s21 + $0x48] sm:$0xff] %v1563_v20 }
 0x385   : > { %v1567_v59 = vpop.f32.mrb[12].mxu1 }
 0x386   : > { %v1568_v56 = vadd.f32 %v3339_v15, %v1567_v59  ;;  %v1569_v43 = vpop.f32.mrb[13].mxu1 }
 0x388   : > { %1686 = vst [vmem:[%s3344_s21 + $0x50] sm:$0xff] %v1568_v56 }
 0x389   : > { %v1572_v22 = vpop.f32.mrb[14].mxu1 }
 0x38a   : > { %v1573_v49 = vadd.f32 %v3339_v15, %v1572_v22  ;;  %v1574_v44 = vpop.f32.mrb[15].mxu1 }
 0x38c   : > { %1687 = vst [vmem:[%s3344_s21 + $0x58] sm:$0xff] %v1573_v49 }
 0x38d   : > { %v1577_v48 = vpop.f32.mrb[16].mxu1 }
 0x38e   : > { %v1578_v62 = vadd.f32 %v3339_v15, %v1577_v48  ;;  %v1579_v45 = vpop.f32.mrb[17].mxu1 }
 0x390   : > { %1688 = vst [vmem:[%s3344_s21 + $0x60] sm:$0xff] %v1578_v62 }
 0x391   : > { %v1582_v38 = vpop.f32.mrb[18].mxu1 }
 0x392   : > { %v1583_v50 = vadd.f32 %v3339_v15, %v1582_v38  ;;  %v1584_v47 = vpop.f32.mrb[19].mxu1 }
 0x394   : > { %1689 = vst [vmem:[%s3344_s21 + $0x68] sm:$0xff] %v1583_v50 }
 0x395   : > { %v1587_v51 = vpop.f32.mrb[20].mxu1 }
 0x396   : > { %v1588_v24 = vadd.f32 %v3339_v15, %v1587_v51  ;;  %v1589_v9 = vpop.f32.mrb[21].mxu1 }
 0x398   : > { %1690 = vst [vmem:[%s3344_s21 + $0x70] sm:$0xff] %v1588_v24 }
 0x399   : > { %v1592_v57 = vpop.f32.mrb[22].mxu1 }
 0x39a   : > { %v1593_v27 = vadd.f32 %v3339_v15, %v1592_v57  ;;  %v1594_v41 = vpop.f32.mrb[23].mxu1 }
 0x39c   : > { %1691 = vst [vmem:[%s3344_s21 + $0x78] sm:$0xff] %v1593_v27 }
 0x39d   : > { %v1597_v25 = vpop.f32.mrb[24].mxu1 }
 0x39e   : > { %v1598_v14 = vadd.f32 %v3339_v15, %v1597_v25  ;;  %v1599_v4 = vpop.f32.mrb[25].mxu1 }
 0x3a0   : > { %1692 = vst [vmem:[%s3344_s21 + $0x80] sm:$0xff] %v1598_v14 }
 0x3a1   : > { %v1602_v23 = vpop.f32.mrb[26].mxu1 }
 0x3a2   : > { %v1603_v12 = vadd.f32 %v3339_v15, %v1602_v23  ;;  %v1604_v26 = vpop.f32.mrb[27].mxu1 }
 0x3a4   : > { %1693 = vst [vmem:[%s3344_s21 + $0x88] sm:$0xff] %v1603_v12 }
 0x3a5   : > { %v1607_v35 = vpop.f32.mrb[28].mxu1 }
 0x3a6   : > { %v1608_v32 = vadd.f32 %v3339_v15, %v1607_v35  ;;  %v1609_v53 = vpop.f32.mrb[29].mxu1 }
 0x3a8   : > { %1694 = vst [vmem:[%s3344_s21 + $0x90] sm:$0xff] %v1608_v32 }
 0x3a9   : > { %v1612_v37 = vpop.f32.mrb[30].mxu1 }
 0x3aa   : > { %v1613_v13 = vadd.f32 %v3339_v15, %v1612_v37  ;;  %v1614_v55 = vpop.f32.mrb[31].mxu1 }
 0x3ac   : > { %1695 = vst [vmem:[%s3344_s21 + $0x98] sm:$0xff] %v1613_v13 }
 0x3ad   : > { %v1617_v19 = vpop.f32.mrb[32].mxu1 }
 0x3ae   : > { %v1618_v54 = vadd.f32 %v3339_v15, %v1617_v19  ;;  %v1619_v29 = vpop.f32.mrb[33].mxu1 }
 0x3b0   : > { %1696 = vst [vmem:[%s3344_s21 + $0xa0] sm:$0xff] %v1618_v54 }
 0x3b1   : > { %v1622_v11 = vpop.f32.mrb[34].mxu1 }
 0x3b2   : > { %v1623_v58 = vadd.f32 %v3339_v15, %v1622_v11  ;;  %v1624_v30 = vpop.f32.mrb[35].mxu1 }
 0x3b4   : > { %1697 = vst [vmem:[%s3344_s21 + $0xa8] sm:$0xff] %v1623_v58 }
 0x3b5   : > { %v1627_v3 = vpop.f32.mrb[36].mxu1 }
 0x3b6   : > { %v1628_v28 = vadd.f32 %v3339_v15, %v1627_v3  ;;  %v1629_v52 = vpop.f32.mrb[37].mxu1 }
 0x3b8   : > { %1698 = vst [vmem:[%s3344_s21 + $0xb0] sm:$0xff] %v1628_v28 }
 0x3b9   : > { %v1632_v60 = vpop.f32.mrb[38].mxu1 }
 0x3ba   : > { %v1633_v18 = vadd.f32 %v3339_v15, %v1632_v60  ;;  %v1634_v61 = vpop.f32.mrb[39].mxu1 }
 0x3bc   : > { %1699 = vst [vmem:[%s3344_s21 + $0xb8] sm:$0xff] %v1633_v18 }
 0x3bd   : > { %v1637_v16 = vpop.f32.mrb[40].mxu1 }
 0x3be   : > { %v1638_v21 = vadd.f32 %v3339_v15, %v1637_v16  ;;  %v1639_v63 = vpop.f32.mrb[41].mxu1 }
 0x3c0   : > { %1700 = vst [vmem:[%s3344_s21 + $0xc0] sm:$0xff] %v1638_v21 }
 0x3c1   : > { %v1642_v1 = vpop.f32.mrb[42].mxu1 }
 0x3c2   : > { %v1643_v17 = vadd.f32 %v3339_v15, %v1642_v1  ;;  %v1644_v8 = vpop.f32.mrb[43].mxu1 }
 0x3c4   : > { %1701 = vst [vmem:[%s3344_s21 + $0xc8] sm:$0xff] %v1643_v17 }
 0x3c5   : > { %v1647_v34 = vpop.f32.mrb[44].mxu1 }
 0x3c6   : > { %v1648_v10 = vadd.f32 %v3339_v15, %v1647_v34  ;;  %v1649_v0 = vpop.f32.mrb[45].mxu1 }
 0x3c8   : > { %1702 = vst [vmem:[%s3344_s21 + $0xd0] sm:$0xff] %v1648_v10 }
 0x3c9   : > { %v1652_v46 = vpop.f32.mrb[46].mxu1 }
 0x3ca   : > { %v1653_v31 = vadd.f32 %v3339_v15, %v1652_v46  ;;  %v1654_v42 = vpop.f32.mrb[47].mxu1 }
 0x3cc   : > { %1703 = vst [vmem:[%s3344_s21 + $0xd8] sm:$0xff] %v1653_v31 }
 0x3cd   : > { %v1657_v36 = vpop.f32.mrb[48].mxu1 }
 0x3ce   : > { %v1658_v7 = vadd.f32 %v3339_v15, %v1657_v36  ;;  %v1659_v39 = vpop.f32.mrb[49].mxu1 }
 0x3d0   : > { %1704 = vst [vmem:[%s3344_s21 + $0xe0] sm:$0xff] %v1658_v7 }
 0x3d1   : > { %v1662_v40 = vpop.f32.mrb[50].mxu1 }
 0x3d2   : > { %v1663_v5 = vadd.f32 %v3339_v15, %v1662_v40  ;;  %v1664_v6 = vpop.f32.mrb[51].mxu1 }
 0x3d4   : > { %1705 = vst [vmem:[%s3344_s21 + $0xe8] sm:$0xff] %v1663_v5 }
 0x3d5   : > { %v1667_v33 = vpop.f32.mrb[52].mxu1 }
 0x3d6   : > { %v1668_v20 = vadd.f32 %v3339_v15, %v1667_v33  ;;  %v1669_v2 = vpop.f32.mrb[53].mxu1 }
 0x3d8   : > { %1706 = vst [vmem:[%s3344_s21 + $0xf0] sm:$0xff] %v1668_v20 }
 0x3d9   : > { %v1672_v59 = vpop.f32.mrb[54].mxu1 }
 0x3da   : > { %v1673_v56 = vadd.f32 %v3339_v15, %v1672_v59  ;;  %v1674_v43 = vpop.f32.mrb[55].mxu1 }
 0x3dc   : > { %1707 = vst [vmem:[%s3344_s21 + $0xf8] sm:$0xff] %v1673_v56 }
 0x3dd   : > { %2315 = shalt.err (!%p2312_p2)
}
 0x3de   : > { %s2316_s16 = scalar_lea.hbm %s3412_s30, 4096  ;;  %s2320_s21 = scalar_lea.hbm %s3467_s7, 8192 }
 0x3df   : > { %p2317_p13 = scmp.ne.s32.totalorder %s3412_s30, %s2316_s16  ;;  %p2321_p4 = scmp.lt.u32.totalorder %s3412_s30, %s3467_s7 }
 0x3e0   : > { %p2322_p7 = scmp.lt.u32.totalorder %s2320_s21, %s2316_s16  ;;  %p2324_p11 = scmp.lt.u32.totalorder %s2316_s16, %s3412_s30 }
 0x3e1   : > { %p2318_p6 = pnand %p2317_p13, %p3483_p0 }
 0x3e2   : > { %p2323_p8 = por %p2322_p7, %p2321_p4 }
 0x3e3   : > { %p2319_p10 = pneg %p2318_p6 }
 0x3e4   : > { %p2325_p1 = por %p2324_p11, %p2323_p8 }
 0x3e6   : > { %p2326_p3 = pnand %p2325_p1, %p2319_p10 }
 0x3e8   : > { %2329 = shalt.err (!%p2326_p3)
}
 0x3e9   : > { %s2384_s15 = smov 128   ;;  %s2385_s23 = smov 8  }
 0x3ea   : > { %1959 = dma.vmem_to_hbm [thread:$0]  (%p3483_p0), %s3414_s29, 4096, %s3412_s30, %s1709_s9, %s2384_s15, %s2384_s15, %s2385_s23  }
 0x3eb PF: > { %s1737_s28 = sand.u32 1, %s2360_s24   ;;  %p3484_p5 = scmp.ne.s32.totalorder %s3473_s8, 0 }
 0x3ec   : > { %p3485_p9 = scmp.ge.s32.totalorder %s2372_s27, 2  ;;  %s1738_s11 = scalar_lea.sflag [#allocation4], %s1737_s28 }
 0x3ee   : > { %p1973_p12 = pnand %p3485_p9, %p3484_p5 }
 0x3f0   : > { %2355 = dma.done.wait (!%p1973_p12), %s1738_s11, 4096  }
 0x3f1   : > { %2357 = vsyncadd (!%p1973_p12), %s1738_s11, 4294963200  ;;  %p21_p2 = scmp.ge.s32.totalorder %s2539_s13, 4   ;;  %s3486_s24 = smov %s2364_s25 }
 0x3f2   : > { %s3487_s25 = smov %s2368_s26  ;;  %s3488_s26 = smov %s2548_s17 }
 0x3f3   : > { %s3489_s27 = smov %s2539_s13  ;;  %23 = sbr.rel (!%p21_p2) target bundleno = 6 (0x6), region = 101 }
 0x3fa   :  { %1743 = vsyncpa [#allocation3], 1 }
 0x3fb   :  { %1745 = vsyncpa [#allocation3 + $0x1], 1 }
 0x3fc   :  { %1746 = vsyncpa [#allocation6], 1 }
 0x3fd   :  { %1747 = vsyncpa [#allocation4], 1 }
 0x3fe   :  { %1749 = vsyncpa [#allocation4 + $0x1], 1 }

</bundles_post_ra>
